<compile_context>
chip_gen: v6e
topology: v6e:2x2x1
jax: 0.10.0
libtpu: 0.0.40
codegen_flags: <defaults>
</compile_context>

<pallas_src>
import functools

import jax
import jax.numpy as jnp
from jax import lax
from jax.experimental import pallas as pl
from jax.experimental.pallas import tpu as pltpu


# ----------------------------------------------------------------------------
# Pallas kernel
# ----------------------------------------------------------------------------
def _make_lstm_kernel(num_layers: int, seq_len: int, batch_tile: int,
                      hidden: int):
    T, TB, H = seq_len, batch_tile, hidden

    def kernel(*refs):
        # refs layout:
        #   [x_ref,
        #    (w_ih_0, w_hh_0, b_0), ..., (w_ih_{L-1}, w_hh_{L-1}, b_{L-1}),
        #    fc_w, fc_b,
        #    out_ref]
        x_ref = refs[0]
        layer_refs = refs[1:1 + 3 * num_layers]
        fc_w_ref = refs[1 + 3 * num_layers]
        fc_b_ref = refs[2 + 3 * num_layers]
        out_ref = refs[3 + 3 * num_layers]

        # Layer-0 input already arrives as a lane-dense (T*TB, Din) 2-D block
        # (flattened in the wrapper), so no in-kernel reshape is needed.
        seq = x_ref[...]                                  # (T*TB, Din) f32

        h_last = None
        for layer in range(num_layers):                   # static layer loop
            w_ih = layer_refs[3 * layer][...]             # (Din, 4H)
            w_hh = layer_refs[3 * layer + 1][...]         # (H,   4H)
            b = layer_refs[3 * layer + 2][...]            # (1,   4H) f32

            # Hoisted batched input projection (+ bias): ONE MXU matmul per
            # layer, off the recurrent critical path.  Kept as a register
            # value (T*TB*4H*4B is tiny here) - no VMEM store/reload.
            pre = jnp.dot(seq.astype(w_ih.dtype), w_ih,
                          preferred_element_type=jnp.float32) + b  # (T*TB,4H)
            # (w_ih is dead after this point; it is not kept live across the
            #  unrolled recurrence.)

            h = jnp.zeros((TB, H), jnp.float32)
            c = jnp.zeros((TB, H), jnp.float32)
            last_layer = layer == num_layers - 1
            outs = []                                     # deferred seq flush

            for t in range(T):                            # static unroll (T small)
                # Only the small recurrent matmul sits on the serial chain.
                gates = pre[t * TB:(t + 1) * TB, :] + jnp.dot(
                    h.astype(w_hh.dtype), w_hh,
                    preferred_element_type=jnp.float32)   # (TB, 4H) f32
                # One full-width sigmoid, one quarter-width tanh (fewer EUP
                # pushes).  Gate math stays f32 on every chip.
                sig = jax.nn.sigmoid(gates)
                i_g = sig[:, 0 * H:1 * H]
                f_g = sig[:, 1 * H:2 * H]
                o_g = sig[:, 3 * H:4 * H]
                g_g = jnp.tanh(gates[:, 2 * H:3 * H])

                c = f_g * c + i_g * g_g
                h = o_g * jnp.tanh(c)
                if not last_layer:
                    outs.append(h)                        # keep in registers

            if not last_layer:
                # Single deferred "flush": the whole layer-output sequence is
                # assembled once and fed to the next layer's projection - no
                # per-step masked vst on the critical path.
                seq = jnp.concatenate(outs, axis=0)       # (T*TB, H)
            h_last = h

        # out[:, -1] of the top layer is just the final hidden state.
        out_ref[...] = (
            jnp.dot(h_last.astype(fc_w_ref.dtype), fc_w_ref[...],
                    preferred_element_type=jnp.float32)
            + fc_b_ref[...]
        )

    return kernel


# ----------------------------------------------------------------------------
# Wrapper
# ----------------------------------------------------------------------------
def lstm_forward(x, params, *, hidden_size: int, num_layers: int,
                 output_dim: int, batch_tile: int | None = None):
    """x: (B, T, D) float32. Returns (B, output_dim) float32.

    batch_tile defaults to the full batch (grid=1).  On v7x pass
    batch_tile=B//2 to split the batch across the two TensorCores.
    """
    B, T, D = x.shape
    H = hidden_size
    TB = B if batch_tile is None else batch_tile
    assert B % TB == 0, "batch must be divisible by the batch tile"
    assert TB == B or TB % 8 == 0, "partial batch tiles must be 8-aligned"
    ntiles = B // TB

    # Time-major, per-tile-contiguous flattening done in the wrapper (free
    # layout plumbing): the kernel receives a lane/sublane-dense 2-D block.
    x_tiles = (x.transpose(1, 0, 2)                 # (T, B, D)
                 .reshape(T, ntiles, TB, D)
                 .transpose(1, 0, 2, 3)             # (ntiles, T, TB, D)
                 .reshape(ntiles, T * TB, D))

    inputs = [x_tiles]
    for layer in range(num_layers):
        w_ih, w_hh, b = params[f"layer_{layer}"]
        inputs += [w_ih, w_hh, b]
    inputs += [params["fc_w"], params["fc_b"]]

    in_specs = [pl.BlockSpec((None, T * TB, D), lambda i: (i, 0, 0))]
    for arr in inputs[1:]:
        # Weights / biases are whole-array resident, identical per grid point.
        in_specs.append(pl.BlockSpec(arr.shape, lambda i: (0, 0)))

    kernel = _make_lstm_kernel(num_layers, T, TB, H)

    out = pl.pallas_call(
        kernel,
        out_shape=jax.ShapeDtypeStruct((B, output_dim), jnp.float32),
        grid=(ntiles,),                              # 1 by default; >=2 on v7x
        in_specs=in_specs,
        out_specs=pl.BlockSpec((TB, output_dim), lambda i: (i, 0)),
        compiler_params=pltpu.CompilerParams(
            dimension_semantics=("parallel",),
            vmem_limit_bytes=32 * 1024 * 1024,
        ),
    )(*inputs)
    return out


# ----------------------------------------------------------------------------
# Deterministic parameter init (PyTorch-style uniform(-1/sqrt(H), 1/sqrt(H)))
# ----------------------------------------------------------------------------
def init_params(key, input_dim, hidden_size, num_layers, output_dim,
                weight_dtype=jnp.float32):
    H = hidden_size
    bound = 1.0 / jnp.sqrt(jnp.float32(H))
    params = {}
    for layer in range(num_layers):
        d_in = input_dim if layer == 0 else H
        key, k1, k2, k3, k4 = jax.random.split(key, 5)
        # PyTorch stores (4H, d_in) / (4H, H); we keep them transposed for x @ W.
        w_ih = jax.random.uniform(k1, (d_in, 4 * H), jnp.float32, -bound, bound)
        w_hh = jax.random.uniform(k2, (H, 4 * H), jnp.float32, -bound, bound)
        b_ih = jax.random.uniform(k3, (4 * H,), jnp.float32, -bound, bound)
        b_hh = jax.random.uniform(k4, (4 * H,), jnp.float32, -bound, bound)
        params[f"layer_{layer}"] = (w_ih.astype(weight_dtype),
                                    w_hh.astype(weight_dtype),
                                    (b_ih + b_hh)[None, :])       # bias stays f32
    key, k1, k2 = jax.random.split(key, 3)
    params["fc_w"] = jax.random.uniform(
        k1, (H, output_dim), jnp.float32, -bound, bound).astype(weight_dtype)
    params["fc_b"] = jax.random.uniform(
        k2, (1, output_dim), jnp.float32, -bound, bound)
    return params


def cast_weights(params, dtype):
    """Cast only the matmul weights (not biases) to `dtype` (e.g. bf16)."""
    out = {}
    for k, v in params.items():
        if k.startswith("layer_"):
            w_ih, w_hh, b = v
            out[k] = (w_ih.astype(dtype), w_hh.astype(dtype), b)
        elif k == "fc_w":
            out[k] = v.astype(dtype)
        else:
            out[k] = v
    return out


# ----------------------------------------------------------------------------
# Pure-JAX reference (for correctness check).  Uses the same mixed-precision
# recipe as the kernel: matmul LHS cast to the weight dtype, f32 accumulation,
# f32 gate math — so bf16-weight runs are directly comparable.
# ----------------------------------------------------------------------------
def lstm_reference(x, params, *, hidden_size, num_layers, output_dim):
    B, T, D = x.shape
    H = hidden_size
    seq = x
    for layer in range(num_layers):
        w_ih, w_hh, b = params[f"layer_{layer}"]

        def step(carry, x_t, w_ih=w_ih, w_hh=w_hh, b=b):
            h, c = carry
            gates = (jnp.dot(x_t.astype(w_ih.dtype), w_ih,
                             preferred_element_type=jnp.float32)
                     + jnp.dot(h.astype(w_hh.dtype), w_hh,
                               preferred_element_type=jnp.float32)
                     + b)
            i = jax.nn.sigmoid(gates[:, 0 * H:1 * H])
            f = jax.nn.sigmoid(gates[:, 1 * H:2 * H])
            g = jnp.tanh(gates[:, 2 * H:3 * H])
            o = jax.nn.sigmoid(gates[:, 3 * H:4 * H])
            c = f * c + i * g
            h = o * jnp.tanh(c)
            return (h, c), h

        init = (jnp.zeros((B, H), jnp.float32), jnp.zeros((B, H), jnp.float32))
        _, outs = lax.scan(step, init, jnp.transpose(seq, (1, 0, 2)))
        seq = jnp.transpose(outs, (1, 0, 2))
    last = seq[:, -1]
    fc_w, fc_b = params["fc_w"], params["fc_b"]
    return (jnp.dot(last.astype(fc_w.dtype), fc_w,
                    preferred_element_type=jnp.float32) + fc_b)


# ----------------------------------------------------------------------------
if __name__ == "__main__":
    B, T = 8, 8            # batch, sequence length
    INPUT_DIM = 16
    HIDDEN = 32
    NUM_LAYERS = 2
    OUTPUT_DIM = 4
    # dropout=0.1 in the module is train-time only -> identity at inference.

    key = jax.random.PRNGKey(0)
    key, kx = jax.random.split(key)
    x = jax.random.normal(kx, (B, T, INPUT_DIM), jnp.float32)

    params = init_params(key, INPUT_DIM, HIDDEN, NUM_LAYERS, OUTPUT_DIM)

    fwd = functools.partial(lstm_forward, hidden_size=HIDDEN,
                            num_layers=NUM_LAYERS, output_dim=OUTPUT_DIM)

    # --- f32 weights: strict check against the f32 reference ---------------
    out = jax.block_until_ready(jax.jit(fwd)(x, params))
    ref = lstm_reference(x, params, hidden_size=HIDDEN,
                         num_layers=NUM_LAYERS, output_dim=OUTPUT_DIM)
    assert out.shape == (B, OUTPUT_DIM)
    assert jnp.allclose(out, ref, atol=1e-4, rtol=1e-4), (
        f"f32 max abs err {jnp.max(jnp.abs(out - ref))}")

    # --- bf16 weights (MXU-native fast path); gate math stays f32 ----------
    params_bf16 = cast_weights(params, jnp.bfloat16)
    out_b = jax.block_until_ready(jax.jit(fwd)(x, params_bf16))
    ref_b = lstm_reference(x, params_bf16, hidden_size=HIDDEN,
                           num_layers=NUM_LAYERS, output_dim=OUTPUT_DIM)
    assert jnp.allclose(out_b, ref_b, atol=5e-3, rtol=5e-3), (
        f"bf16 max abs err {jnp.max(jnp.abs(out_b - ref_b))}")

    print("KERNEL_OK")
</pallas_src>

<mosaic_0001>
module attributes {stable_mosaic.version = 11 : i64} {
  func.func @kernel(%arg0: i32, %arg1: memref<1x64x16xf32, #tpu.memory_space<vmem>>, %arg2: memref<16x128xf32, #tpu.memory_space<vmem>>, %arg3: memref<32x128xf32, #tpu.memory_space<vmem>>, %arg4: memref<1x128xf32, #tpu.memory_space<vmem>>, %arg5: memref<32x128xf32, #tpu.memory_space<vmem>>, %arg6: memref<32x128xf32, #tpu.memory_space<vmem>>, %arg7: memref<1x128xf32, #tpu.memory_space<vmem>>, %arg8: memref<32x4xf32, #tpu.memory_space<vmem>>, %arg9: memref<1x4xf32, #tpu.memory_space<vmem>>, %arg10: memref<8x4xf32, #tpu.memory_space<vmem>>) attributes {dimension_semantics = [#tpu.dimension_semantics<parallel>], iteration_bounds = array<i64: 1>, scalar_prefetch = 0 : i64, scratch_operands = 0 : i64, tpu.core_type = #tpu.core_type<tc>, window_params = [{transform_indices = @transform_0, window_bounds = array<i64: 1, 64, 16>}, {pipeline_mode = #tpu.pipeline_mode<synchronous>, transform_indices = @transform_1, window_bounds = array<i64: 16, 128>}, {pipeline_mode = #tpu.pipeline_mode<synchronous>, transform_indices = @transform_2, window_bounds = array<i64: 32, 128>}, {pipeline_mode = #tpu.pipeline_mode<synchronous>, transform_indices = @transform_3, window_bounds = array<i64: 1, 128>}, {pipeline_mode = #tpu.pipeline_mode<synchronous>, transform_indices = @transform_4, window_bounds = array<i64: 32, 128>}, {pipeline_mode = #tpu.pipeline_mode<synchronous>, transform_indices = @transform_5, window_bounds = array<i64: 32, 128>}, {pipeline_mode = #tpu.pipeline_mode<synchronous>, transform_indices = @transform_6, window_bounds = array<i64: 1, 128>}, {pipeline_mode = #tpu.pipeline_mode<synchronous>, transform_indices = @transform_7, window_bounds = array<i64: 32, 4>}, {pipeline_mode = #tpu.pipeline_mode<synchronous>, transform_indices = @transform_8, window_bounds = array<i64: 1, 4>}, {transform_indices = @transform_9, window_bounds = array<i64: 8, 4>}]} {
    %c0 = arith.constant 0 : index
    %c0_0 = arith.constant 0 : index
    %c0_1 = arith.constant 0 : index
    %0 = vector.load %arg1[%c0, %c0_0, %c0_1] : memref<1x64x16xf32, #tpu.memory_space<vmem>>, vector<1x64x16xf32>
    %1 = vector.shape_cast %0 : vector<1x64x16xf32> to vector<64x16xf32>
    %c0_2 = arith.constant 0 : index
    %c0_3 = arith.constant 0 : index
    %2 = vector.load %arg2[%c0_2, %c0_3] : memref<16x128xf32, #tpu.memory_space<vmem>>, vector<16x128xf32>
    %c0_4 = arith.constant 0 : index
    %c0_5 = arith.constant 0 : index
    %3 = vector.load %arg3[%c0_4, %c0_5] : memref<32x128xf32, #tpu.memory_space<vmem>>, vector<32x128xf32>
    %c0_6 = arith.constant 0 : index
    %c0_7 = arith.constant 0 : index
    %4 = vector.load %arg4[%c0_6, %c0_7] : memref<1x128xf32, #tpu.memory_space<vmem>>, vector<1x128xf32>
    %cst = arith.constant dense<0.000000e+00> : vector<64x128xf32>
    %5 = tpu.matmul %1, %2, %cst {dimension_numbers = #tpu.dot_dimension_numbers<[1], [0], [0], [1], [0, 0, 1, 1], [], []>} : vector<64x16xf32>, vector<16x128xf32>, vector<64x128xf32> -> vector<64x128xf32>
    %6 = vector.broadcast %4 : vector<1x128xf32> to vector<64x128xf32>
    %7 = arith.addf %5, %6 : vector<64x128xf32>
    %cst_8 = arith.constant 0.000000e+00 : f32
    %8 = vector.broadcast %cst_8 : f32 to vector<8x32xf32>
    %cst_9 = arith.constant 0.000000e+00 : f32
    %9 = vector.broadcast %cst_9 : f32 to vector<8x32xf32>
    %10 = vector.extract_strided_slice %7 {offsets = [0, 0], sizes = [8, 128], strides = [1, 1]} : vector<64x128xf32> to vector<8x128xf32>
    %cst_10 = arith.constant dense<0.000000e+00> : vector<8x128xf32>
    %11 = tpu.matmul %8, %3, %cst_10 {dimension_numbers = #tpu.dot_dimension_numbers<[1], [0], [0], [1], [0, 0, 1, 1], [], []>} : vector<8x32xf32>, vector<32x128xf32>, vector<8x128xf32> -> vector<8x128xf32>
    %12 = arith.addf %10, %11 : vector<8x128xf32>
    %13 = arith.negf %12 : vector<8x128xf32>
    %14 = math.exp %13 : vector<8x128xf32>
    %cst_11 = arith.constant 1.000000e+00 : f32
    %15 = vector.broadcast %cst_11 : f32 to vector<8x128xf32>
    %16 = arith.addf %15, %14 : vector<8x128xf32>
    %17 = arith.divf %15, %16 : vector<8x128xf32>
    %18 = vector.extract_strided_slice %17 {offsets = [0, 0], sizes = [8, 32], strides = [1, 1]} : vector<8x128xf32> to vector<8x32xf32>
    %19 = vector.extract_strided_slice %17 {offsets = [0, 32], sizes = [8, 32], strides = [1, 1]} : vector<8x128xf32> to vector<8x32xf32>
    %20 = vector.extract_strided_slice %17 {offsets = [0, 96], sizes = [8, 32], strides = [1, 1]} : vector<8x128xf32> to vector<8x32xf32>
    %21 = vector.extract_strided_slice %12 {offsets = [0, 64], sizes = [8, 32], strides = [1, 1]} : vector<8x128xf32> to vector<8x32xf32>
    %22 = math.tanh %21 : vector<8x32xf32>
    %23 = arith.mulf %19, %9 : vector<8x32xf32>
    %24 = arith.mulf %18, %22 : vector<8x32xf32>
    %25 = arith.addf %23, %24 : vector<8x32xf32>
    %26 = math.tanh %25 : vector<8x32xf32>
    %27 = arith.mulf %20, %26 : vector<8x32xf32>
    %28 = vector.extract_strided_slice %7 {offsets = [8, 0], sizes = [8, 128], strides = [1, 1]} : vector<64x128xf32> to vector<8x128xf32>
    %cst_12 = arith.constant dense<0.000000e+00> : vector<8x128xf32>
    %29 = tpu.matmul %27, %3, %cst_12 {dimension_numbers = #tpu.dot_dimension_numbers<[1], [0], [0], [1], [0, 0, 1, 1], [], []>} : vector<8x32xf32>, vector<32x128xf32>, vector<8x128xf32> -> vector<8x128xf32>
    %30 = arith.addf %28, %29 : vector<8x128xf32>
    %31 = arith.negf %30 : vector<8x128xf32>
    %32 = math.exp %31 : vector<8x128xf32>
    %cst_13 = arith.constant 1.000000e+00 : f32
    %33 = vector.broadcast %cst_13 : f32 to vector<8x128xf32>
    %34 = arith.addf %33, %32 : vector<8x128xf32>
    %35 = arith.divf %33, %34 : vector<8x128xf32>
    %36 = vector.extract_strided_slice %35 {offsets = [0, 0], sizes = [8, 32], strides = [1, 1]} : vector<8x128xf32> to vector<8x32xf32>
    %37 = vector.extract_strided_slice %35 {offsets = [0, 32], sizes = [8, 32], strides = [1, 1]} : vector<8x128xf32> to vector<8x32xf32>
    %38 = vector.extract_strided_slice %35 {offsets = [0, 96], sizes = [8, 32], strides = [1, 1]} : vector<8x128xf32> to vector<8x32xf32>
    %39 = vector.extract_strided_slice %30 {offsets = [0, 64], sizes = [8, 32], strides = [1, 1]} : vector<8x128xf32> to vector<8x32xf32>
    %40 = math.tanh %39 : vector<8x32xf32>
    %41 = arith.mulf %37, %25 : vector<8x32xf32>
    %42 = arith.mulf %36, %40 : vector<8x32xf32>
    %43 = arith.addf %41, %42 : vector<8x32xf32>
    %44 = math.tanh %43 : vector<8x32xf32>
    %45 = arith.mulf %38, %44 : vector<8x32xf32>
    %46 = vector.extract_strided_slice %7 {offsets = [16, 0], sizes = [8, 128], strides = [1, 1]} : vector<64x128xf32> to vector<8x128xf32>
    %cst_14 = arith.constant dense<0.000000e+00> : vector<8x128xf32>
    %47 = tpu.matmul %45, %3, %cst_14 {dimension_numbers = #tpu.dot_dimension_numbers<[1], [0], [0], [1], [0, 0, 1, 1], [], []>} : vector<8x32xf32>, vector<32x128xf32>, vector<8x128xf32> -> vector<8x128xf32>
    %48 = arith.addf %46, %47 : vector<8x128xf32>
    %49 = arith.negf %48 : vector<8x128xf32>
    %50 = math.exp %49 : vector<8x128xf32>
    %cst_15 = arith.constant 1.000000e+00 : f32
    %51 = vector.broadcast %cst_15 : f32 to vector<8x128xf32>
    %52 = arith.addf %51, %50 : vector<8x128xf32>
    %53 = arith.divf %51, %52 : vector<8x128xf32>
    %54 = vector.extract_strided_slice %53 {offsets = [0, 0], sizes = [8, 32], strides = [1, 1]} : vector<8x128xf32> to vector<8x32xf32>
    %55 = vector.extract_strided_slice %53 {offsets = [0, 32], sizes = [8, 32], strides = [1, 1]} : vector<8x128xf32> to vector<8x32xf32>
    %56 = vector.extract_strided_slice %53 {offsets = [0, 96], sizes = [8, 32], strides = [1, 1]} : vector<8x128xf32> to vector<8x32xf32>
    %57 = vector.extract_strided_slice %48 {offsets = [0, 64], sizes = [8, 32], strides = [1, 1]} : vector<8x128xf32> to vector<8x32xf32>
    %58 = math.tanh %57 : vector<8x32xf32>
    %59 = arith.mulf %55, %43 : vector<8x32xf32>
    %60 = arith.mulf %54, %58 : vector<8x32xf32>
    %61 = arith.addf %59, %60 : vector<8x32xf32>
    %62 = math.tanh %61 : vector<8x32xf32>
    %63 = arith.mulf %56, %62 : vector<8x32xf32>
    %64 = vector.extract_strided_slice %7 {offsets = [24, 0], sizes = [8, 128], strides = [1, 1]} : vector<64x128xf32> to vector<8x128xf32>
    %cst_16 = arith.constant dense<0.000000e+00> : vector<8x128xf32>
    %65 = tpu.matmul %63, %3, %cst_16 {dimension_numbers = #tpu.dot_dimension_numbers<[1], [0], [0], [1], [0, 0, 1, 1], [], []>} : vector<8x32xf32>, vector<32x128xf32>, vector<8x128xf32> -> vector<8x128xf32>
    %66 = arith.addf %64, %65 : vector<8x128xf32>
    %67 = arith.negf %66 : vector<8x128xf32>
    %68 = math.exp %67 : vector<8x128xf32>
    %cst_17 = arith.constant 1.000000e+00 : f32
    %69 = vector.broadcast %cst_17 : f32 to vector<8x128xf32>
    %70 = arith.addf %69, %68 : vector<8x128xf32>
    %71 = arith.divf %69, %70 : vector<8x128xf32>
    %72 = vector.extract_strided_slice %71 {offsets = [0, 0], sizes = [8, 32], strides = [1, 1]} : vector<8x128xf32> to vector<8x32xf32>
    %73 = vector.extract_strided_slice %71 {offsets = [0, 32], sizes = [8, 32], strides = [1, 1]} : vector<8x128xf32> to vector<8x32xf32>
    %74 = vector.extract_strided_slice %71 {offsets = [0, 96], sizes = [8, 32], strides = [1, 1]} : vector<8x128xf32> to vector<8x32xf32>
    %75 = vector.extract_strided_slice %66 {offsets = [0, 64], sizes = [8, 32], strides = [1, 1]} : vector<8x128xf32> to vector<8x32xf32>
    %76 = math.tanh %75 : vector<8x32xf32>
    %77 = arith.mulf %73, %61 : vector<8x32xf32>
    %78 = arith.mulf %72, %76 : vector<8x32xf32>
    %79 = arith.addf %77, %78 : vector<8x32xf32>
    %80 = math.tanh %79 : vector<8x32xf32>
    %81 = arith.mulf %74, %80 : vector<8x32xf32>
    %82 = vector.extract_strided_slice %7 {offsets = [32, 0], sizes = [8, 128], strides = [1, 1]} : vector<64x128xf32> to vector<8x128xf32>
    %cst_18 = arith.constant dense<0.000000e+00> : vector<8x128xf32>
    %83 = tpu.matmul %81, %3, %cst_18 {dimension_numbers = #tpu.dot_dimension_numbers<[1], [0], [0], [1], [0, 0, 1, 1], [], []>} : vector<8x32xf32>, vector<32x128xf32>, vector<8x128xf32> -> vector<8x128xf32>
    %84 = arith.addf %82, %83 : vector<8x128xf32>
    %85 = arith.negf %84 : vector<8x128xf32>
    %86 = math.exp %85 : vector<8x128xf32>
    %cst_19 = arith.constant 1.000000e+00 : f32
    %87 = vector.broadcast %cst_19 : f32 to vector<8x128xf32>
    %88 = arith.addf %87, %86 : vector<8x128xf32>
    %89 = arith.divf %87, %88 : vector<8x128xf32>
    %90 = vector.extract_strided_slice %89 {offsets = [0, 0], sizes = [8, 32], strides = [1, 1]} : vector<8x128xf32> to vector<8x32xf32>
    %91 = vector.extract_strided_slice %89 {offsets = [0, 32], sizes = [8, 32], strides = [1, 1]} : vector<8x128xf32> to vector<8x32xf32>
    %92 = vector.extract_strided_slice %89 {offsets = [0, 96], sizes = [8, 32], strides = [1, 1]} : vector<8x128xf32> to vector<8x32xf32>
    %93 = vector.extract_strided_slice %84 {offsets = [0, 64], sizes = [8, 32], strides = [1, 1]} : vector<8x128xf32> to vector<8x32xf32>
    %94 = math.tanh %93 : vector<8x32xf32>
    %95 = arith.mulf %91, %79 : vector<8x32xf32>
    %96 = arith.mulf %90, %94 : vector<8x32xf32>
    %97 = arith.addf %95, %96 : vector<8x32xf32>
    %98 = math.tanh %97 : vector<8x32xf32>
    %99 = arith.mulf %92, %98 : vector<8x32xf32>
    %100 = vector.extract_strided_slice %7 {offsets = [40, 0], sizes = [8, 128], strides = [1, 1]} : vector<64x128xf32> to vector<8x128xf32>
    %cst_20 = arith.constant dense<0.000000e+00> : vector<8x128xf32>
    %101 = tpu.matmul %99, %3, %cst_20 {dimension_numbers = #tpu.dot_dimension_numbers<[1], [0], [0], [1], [0, 0, 1, 1], [], []>} : vector<8x32xf32>, vector<32x128xf32>, vector<8x128xf32> -> vector<8x128xf32>
    %102 = arith.addf %100, %101 : vector<8x128xf32>
    %103 = arith.negf %102 : vector<8x128xf32>
    %104 = math.exp %103 : vector<8x128xf32>
    %cst_21 = arith.constant 1.000000e+00 : f32
    %105 = vector.broadcast %cst_21 : f32 to vector<8x128xf32>
    %106 = arith.addf %105, %104 : vector<8x128xf32>
    %107 = arith.divf %105, %106 : vector<8x128xf32>
    %108 = vector.extract_strided_slice %107 {offsets = [0, 0], sizes = [8, 32], strides = [1, 1]} : vector<8x128xf32> to vector<8x32xf32>
    %109 = vector.extract_strided_slice %107 {offsets = [0, 32], sizes = [8, 32], strides = [1, 1]} : vector<8x128xf32> to vector<8x32xf32>
    %110 = vector.extract_strided_slice %107 {offsets = [0, 96], sizes = [8, 32], strides = [1, 1]} : vector<8x128xf32> to vector<8x32xf32>
    %111 = vector.extract_strided_slice %102 {offsets = [0, 64], sizes = [8, 32], strides = [1, 1]} : vector<8x128xf32> to vector<8x32xf32>
    %112 = math.tanh %111 : vector<8x32xf32>
    %113 = arith.mulf %109, %97 : vector<8x32xf32>
    %114 = arith.mulf %108, %112 : vector<8x32xf32>
    %115 = arith.addf %113, %114 : vector<8x32xf32>
    %116 = math.tanh %115 : vector<8x32xf32>
    %117 = arith.mulf %110, %116 : vector<8x32xf32>
    %118 = vector.extract_strided_slice %7 {offsets = [48, 0], sizes = [8, 128], strides = [1, 1]} : vector<64x128xf32> to vector<8x128xf32>
    %cst_22 = arith.constant dense<0.000000e+00> : vector<8x128xf32>
    %119 = tpu.matmul %117, %3, %cst_22 {dimension_numbers = #tpu.dot_dimension_numbers<[1], [0], [0], [1], [0, 0, 1, 1], [], []>} : vector<8x32xf32>, vector<32x128xf32>, vector<8x128xf32> -> vector<8x128xf32>
    %120 = arith.addf %118, %119 : vector<8x128xf32>
    %121 = arith.negf %120 : vector<8x128xf32>
    %122 = math.exp %121 : vector<8x128xf32>
    %cst_23 = arith.constant 1.000000e+00 : f32
    %123 = vector.broadcast %cst_23 : f32 to vector<8x128xf32>
    %124 = arith.addf %123, %122 : vector<8x128xf32>
    %125 = arith.divf %123, %124 : vector<8x128xf32>
    %126 = vector.extract_strided_slice %125 {offsets = [0, 0], sizes = [8, 32], strides = [1, 1]} : vector<8x128xf32> to vector<8x32xf32>
    %127 = vector.extract_strided_slice %125 {offsets = [0, 32], sizes = [8, 32], strides = [1, 1]} : vector<8x128xf32> to vector<8x32xf32>
    %128 = vector.extract_strided_slice %125 {offsets = [0, 96], sizes = [8, 32], strides = [1, 1]} : vector<8x128xf32> to vector<8x32xf32>
    %129 = vector.extract_strided_slice %120 {offsets = [0, 64], sizes = [8, 32], strides = [1, 1]} : vector<8x128xf32> to vector<8x32xf32>
    %130 = math.tanh %129 : vector<8x32xf32>
    %131 = arith.mulf %127, %115 : vector<8x32xf32>
    %132 = arith.mulf %126, %130 : vector<8x32xf32>
    %133 = arith.addf %131, %132 : vector<8x32xf32>
    %134 = math.tanh %133 : vector<8x32xf32>
    %135 = arith.mulf %128, %134 : vector<8x32xf32>
    %136 = vector.extract_strided_slice %7 {offsets = [56, 0], sizes = [8, 128], strides = [1, 1]} : vector<64x128xf32> to vector<8x128xf32>
    %cst_24 = arith.constant dense<0.000000e+00> : vector<8x128xf32>
    %137 = tpu.matmul %135, %3, %cst_24 {dimension_numbers = #tpu.dot_dimension_numbers<[1], [0], [0], [1], [0, 0, 1, 1], [], []>} : vector<8x32xf32>, vector<32x128xf32>, vector<8x128xf32> -> vector<8x128xf32>
    %138 = arith.addf %136, %137 : vector<8x128xf32>
    %139 = arith.negf %138 : vector<8x128xf32>
    %140 = math.exp %139 : vector<8x128xf32>
    %cst_25 = arith.constant 1.000000e+00 : f32
    %141 = vector.broadcast %cst_25 : f32 to vector<8x128xf32>
    %142 = arith.addf %141, %140 : vector<8x128xf32>
    %143 = arith.divf %141, %142 : vector<8x128xf32>
    %144 = vector.extract_strided_slice %143 {offsets = [0, 0], sizes = [8, 32], strides = [1, 1]} : vector<8x128xf32> to vector<8x32xf32>
    %145 = vector.extract_strided_slice %143 {offsets = [0, 32], sizes = [8, 32], strides = [1, 1]} : vector<8x128xf32> to vector<8x32xf32>
    %146 = vector.extract_strided_slice %143 {offsets = [0, 96], sizes = [8, 32], strides = [1, 1]} : vector<8x128xf32> to vector<8x32xf32>
    %147 = vector.extract_strided_slice %138 {offsets = [0, 64], sizes = [8, 32], strides = [1, 1]} : vector<8x128xf32> to vector<8x32xf32>
    %148 = math.tanh %147 : vector<8x32xf32>
    %149 = arith.mulf %145, %133 : vector<8x32xf32>
    %150 = arith.mulf %144, %148 : vector<8x32xf32>
    %151 = arith.addf %149, %150 : vector<8x32xf32>
    %152 = math.tanh %151 : vector<8x32xf32>
    %153 = arith.mulf %146, %152 : vector<8x32xf32>
    %154 = tpu.concatenate %27, %45, %63, %81, %99, %117, %135, %153 in 0 : vector<8x32xf32>, vector<8x32xf32>, vector<8x32xf32>, vector<8x32xf32>, vector<8x32xf32>, vector<8x32xf32>, vector<8x32xf32>, vector<8x32xf32> -> vector<64x32xf32>
    %c0_26 = arith.constant 0 : index
    %c0_27 = arith.constant 0 : index
    %155 = vector.load %arg5[%c0_26, %c0_27] : memref<32x128xf32, #tpu.memory_space<vmem>>, vector<32x128xf32>
    %c0_28 = arith.constant 0 : index
    %c0_29 = arith.constant 0 : index
    %156 = vector.load %arg6[%c0_28, %c0_29] : memref<32x128xf32, #tpu.memory_space<vmem>>, vector<32x128xf32>
    %c0_30 = arith.constant 0 : index
    %c0_31 = arith.constant 0 : index
    %157 = vector.load %arg7[%c0_30, %c0_31] : memref<1x128xf32, #tpu.memory_space<vmem>>, vector<1x128xf32>
    %cst_32 = arith.constant dense<0.000000e+00> : vector<64x128xf32>
    %158 = tpu.matmul %154, %155, %cst_32 {dimension_numbers = #tpu.dot_dimension_numbers<[1], [0], [0], [1], [0, 0, 1, 1], [], []>} : vector<64x32xf32>, vector<32x128xf32>, vector<64x128xf32> -> vector<64x128xf32>
    %159 = vector.broadcast %157 : vector<1x128xf32> to vector<64x128xf32>
    %160 = arith.addf %158, %159 : vector<64x128xf32>
    %cst_33 = arith.constant 0.000000e+00 : f32
    %161 = vector.broadcast %cst_33 : f32 to vector<8x32xf32>
    %cst_34 = arith.constant 0.000000e+00 : f32
    %162 = vector.broadcast %cst_34 : f32 to vector<8x32xf32>
    %163 = vector.extract_strided_slice %160 {offsets = [0, 0], sizes = [8, 128], strides = [1, 1]} : vector<64x128xf32> to vector<8x128xf32>
    %cst_35 = arith.constant dense<0.000000e+00> : vector<8x128xf32>
    %164 = tpu.matmul %161, %156, %cst_35 {dimension_numbers = #tpu.dot_dimension_numbers<[1], [0], [0], [1], [0, 0, 1, 1], [], []>} : vector<8x32xf32>, vector<32x128xf32>, vector<8x128xf32> -> vector<8x128xf32>
    %165 = arith.addf %163, %164 : vector<8x128xf32>
    %166 = arith.negf %165 : vector<8x128xf32>
    %167 = math.exp %166 : vector<8x128xf32>
    %cst_36 = arith.constant 1.000000e+00 : f32
    %168 = vector.broadcast %cst_36 : f32 to vector<8x128xf32>
    %169 = arith.addf %168, %167 : vector<8x128xf32>
    %170 = arith.divf %168, %169 : vector<8x128xf32>
    %171 = vector.extract_strided_slice %170 {offsets = [0, 0], sizes = [8, 32], strides = [1, 1]} : vector<8x128xf32> to vector<8x32xf32>
    %172 = vector.extract_strided_slice %170 {offsets = [0, 32], sizes = [8, 32], strides = [1, 1]} : vector<8x128xf32> to vector<8x32xf32>
    %173 = vector.extract_strided_slice %170 {offsets = [0, 96], sizes = [8, 32], strides = [1, 1]} : vector<8x128xf32> to vector<8x32xf32>
    %174 = vector.extract_strided_slice %165 {offsets = [0, 64], sizes = [8, 32], strides = [1, 1]} : vector<8x128xf32> to vector<8x32xf32>
    %175 = math.tanh %174 : vector<8x32xf32>
    %176 = arith.mulf %172, %162 : vector<8x32xf32>
    %177 = arith.mulf %171, %175 : vector<8x32xf32>
    %178 = arith.addf %176, %177 : vector<8x32xf32>
    %179 = math.tanh %178 : vector<8x32xf32>
    %180 = arith.mulf %173, %179 : vector<8x32xf32>
    %181 = vector.extract_strided_slice %160 {offsets = [8, 0], sizes = [8, 128], strides = [1, 1]} : vector<64x128xf32> to vector<8x128xf32>
    %cst_37 = arith.constant dense<0.000000e+00> : vector<8x128xf32>
    %182 = tpu.matmul %180, %156, %cst_37 {dimension_numbers = #tpu.dot_dimension_numbers<[1], [0], [0], [1], [0, 0, 1, 1], [], []>} : vector<8x32xf32>, vector<32x128xf32>, vector<8x128xf32> -> vector<8x128xf32>
    %183 = arith.addf %181, %182 : vector<8x128xf32>
    %184 = arith.negf %183 : vector<8x128xf32>
    %185 = math.exp %184 : vector<8x128xf32>
    %cst_38 = arith.constant 1.000000e+00 : f32
    %186 = vector.broadcast %cst_38 : f32 to vector<8x128xf32>
    %187 = arith.addf %186, %185 : vector<8x128xf32>
    %188 = arith.divf %186, %187 : vector<8x128xf32>
    %189 = vector.extract_strided_slice %188 {offsets = [0, 0], sizes = [8, 32], strides = [1, 1]} : vector<8x128xf32> to vector<8x32xf32>
    %190 = vector.extract_strided_slice %188 {offsets = [0, 32], sizes = [8, 32], strides = [1, 1]} : vector<8x128xf32> to vector<8x32xf32>
    %191 = vector.extract_strided_slice %188 {offsets = [0, 96], sizes = [8, 32], strides = [1, 1]} : vector<8x128xf32> to vector<8x32xf32>
    %192 = vector.extract_strided_slice %183 {offsets = [0, 64], sizes = [8, 32], strides = [1, 1]} : vector<8x128xf32> to vector<8x32xf32>
    %193 = math.tanh %192 : vector<8x32xf32>
    %194 = arith.mulf %190, %178 : vector<8x32xf32>
    %195 = arith.mulf %189, %193 : vector<8x32xf32>
    %196 = arith.addf %194, %195 : vector<8x32xf32>
    %197 = math.tanh %196 : vector<8x32xf32>
    %198 = arith.mulf %191, %197 : vector<8x32xf32>
    %199 = vector.extract_strided_slice %160 {offsets = [16, 0], sizes = [8, 128], strides = [1, 1]} : vector<64x128xf32> to vector<8x128xf32>
    %cst_39 = arith.constant dense<0.000000e+00> : vector<8x128xf32>
    %200 = tpu.matmul %198, %156, %cst_39 {dimension_numbers = #tpu.dot_dimension_numbers<[1], [0], [0], [1], [0, 0, 1, 1], [], []>} : vector<8x32xf32>, vector<32x128xf32>, vector<8x128xf32> -> vector<8x128xf32>
    %201 = arith.addf %199, %200 : vector<8x128xf32>
    %202 = arith.negf %201 : vector<8x128xf32>
    %203 = math.exp %202 : vector<8x128xf32>
    %cst_40 = arith.constant 1.000000e+00 : f32
    %204 = vector.broadcast %cst_40 : f32 to vector<8x128xf32>
    %205 = arith.addf %204, %203 : vector<8x128xf32>
    %206 = arith.divf %204, %205 : vector<8x128xf32>
    %207 = vector.extract_strided_slice %206 {offsets = [0, 0], sizes = [8, 32], strides = [1, 1]} : vector<8x128xf32> to vector<8x32xf32>
    %208 = vector.extract_strided_slice %206 {offsets = [0, 32], sizes = [8, 32], strides = [1, 1]} : vector<8x128xf32> to vector<8x32xf32>
    %209 = vector.extract_strided_slice %206 {offsets = [0, 96], sizes = [8, 32], strides = [1, 1]} : vector<8x128xf32> to vector<8x32xf32>
    %210 = vector.extract_strided_slice %201 {offsets = [0, 64], sizes = [8, 32], strides = [1, 1]} : vector<8x128xf32> to vector<8x32xf32>
    %211 = math.tanh %210 : vector<8x32xf32>
    %212 = arith.mulf %208, %196 : vector<8x32xf32>
    %213 = arith.mulf %207, %211 : vector<8x32xf32>
    %214 = arith.addf %212, %213 : vector<8x32xf32>
    %215 = math.tanh %214 : vector<8x32xf32>
    %216 = arith.mulf %209, %215 : vector<8x32xf32>
    %217 = vector.extract_strided_slice %160 {offsets = [24, 0], sizes = [8, 128], strides = [1, 1]} : vector<64x128xf32> to vector<8x128xf32>
    %cst_41 = arith.constant dense<0.000000e+00> : vector<8x128xf32>
    %218 = tpu.matmul %216, %156, %cst_41 {dimension_numbers = #tpu.dot_dimension_numbers<[1], [0], [0], [1], [0, 0, 1, 1], [], []>} : vector<8x32xf32>, vector<32x128xf32>, vector<8x128xf32> -> vector<8x128xf32>
    %219 = arith.addf %217, %218 : vector<8x128xf32>
    %220 = arith.negf %219 : vector<8x128xf32>
    %221 = math.exp %220 : vector<8x128xf32>
    %cst_42 = arith.constant 1.000000e+00 : f32
    %222 = vector.broadcast %cst_42 : f32 to vector<8x128xf32>
    %223 = arith.addf %222, %221 : vector<8x128xf32>
    %224 = arith.divf %222, %223 : vector<8x128xf32>
    %225 = vector.extract_strided_slice %224 {offsets = [0, 0], sizes = [8, 32], strides = [1, 1]} : vector<8x128xf32> to vector<8x32xf32>
    %226 = vector.extract_strided_slice %224 {offsets = [0, 32], sizes = [8, 32], strides = [1, 1]} : vector<8x128xf32> to vector<8x32xf32>
    %227 = vector.extract_strided_slice %224 {offsets = [0, 96], sizes = [8, 32], strides = [1, 1]} : vector<8x128xf32> to vector<8x32xf32>
    %228 = vector.extract_strided_slice %219 {offsets = [0, 64], sizes = [8, 32], strides = [1, 1]} : vector<8x128xf32> to vector<8x32xf32>
    %229 = math.tanh %228 : vector<8x32xf32>
    %230 = arith.mulf %226, %214 : vector<8x32xf32>
    %231 = arith.mulf %225, %229 : vector<8x32xf32>
    %232 = arith.addf %230, %231 : vector<8x32xf32>
    %233 = math.tanh %232 : vector<8x32xf32>
    %234 = arith.mulf %227, %233 : vector<8x32xf32>
    %235 = vector.extract_strided_slice %160 {offsets = [32, 0], sizes = [8, 128], strides = [1, 1]} : vector<64x128xf32> to vector<8x128xf32>
    %cst_43 = arith.constant dense<0.000000e+00> : vector<8x128xf32>
    %236 = tpu.matmul %234, %156, %cst_43 {dimension_numbers = #tpu.dot_dimension_numbers<[1], [0], [0], [1], [0, 0, 1, 1], [], []>} : vector<8x32xf32>, vector<32x128xf32>, vector<8x128xf32> -> vector<8x128xf32>
    %237 = arith.addf %235, %236 : vector<8x128xf32>
    %238 = arith.negf %237 : vector<8x128xf32>
    %239 = math.exp %238 : vector<8x128xf32>
    %cst_44 = arith.constant 1.000000e+00 : f32
    %240 = vector.broadcast %cst_44 : f32 to vector<8x128xf32>
    %241 = arith.addf %240, %239 : vector<8x128xf32>
    %242 = arith.divf %240, %241 : vector<8x128xf32>
    %243 = vector.extract_strided_slice %242 {offsets = [0, 0], sizes = [8, 32], strides = [1, 1]} : vector<8x128xf32> to vector<8x32xf32>
    %244 = vector.extract_strided_slice %242 {offsets = [0, 32], sizes = [8, 32], strides = [1, 1]} : vector<8x128xf32> to vector<8x32xf32>
    %245 = vector.extract_strided_slice %242 {offsets = [0, 96], sizes = [8, 32], strides = [1, 1]} : vector<8x128xf32> to vector<8x32xf32>
    %246 = vector.extract_strided_slice %237 {offsets = [0, 64], sizes = [8, 32], strides = [1, 1]} : vector<8x128xf32> to vector<8x32xf32>
    %247 = math.tanh %246 : vector<8x32xf32>
    %248 = arith.mulf %244, %232 : vector<8x32xf32>
    %249 = arith.mulf %243, %247 : vector<8x32xf32>
    %250 = arith.addf %248, %249 : vector<8x32xf32>
    %251 = math.tanh %250 : vector<8x32xf32>
    %252 = arith.mulf %245, %251 : vector<8x32xf32>
    %253 = vector.extract_strided_slice %160 {offsets = [40, 0], sizes = [8, 128], strides = [1, 1]} : vector<64x128xf32> to vector<8x128xf32>
    %cst_45 = arith.constant dense<0.000000e+00> : vector<8x128xf32>
    %254 = tpu.matmul %252, %156, %cst_45 {dimension_numbers = #tpu.dot_dimension_numbers<[1], [0], [0], [1], [0, 0, 1, 1], [], []>} : vector<8x32xf32>, vector<32x128xf32>, vector<8x128xf32> -> vector<8x128xf32>
    %255 = arith.addf %253, %254 : vector<8x128xf32>
    %256 = arith.negf %255 : vector<8x128xf32>
    %257 = math.exp %256 : vector<8x128xf32>
    %cst_46 = arith.constant 1.000000e+00 : f32
    %258 = vector.broadcast %cst_46 : f32 to vector<8x128xf32>
    %259 = arith.addf %258, %257 : vector<8x128xf32>
    %260 = arith.divf %258, %259 : vector<8x128xf32>
    %261 = vector.extract_strided_slice %260 {offsets = [0, 0], sizes = [8, 32], strides = [1, 1]} : vector<8x128xf32> to vector<8x32xf32>
    %262 = vector.extract_strided_slice %260 {offsets = [0, 32], sizes = [8, 32], strides = [1, 1]} : vector<8x128xf32> to vector<8x32xf32>
    %263 = vector.extract_strided_slice %260 {offsets = [0, 96], sizes = [8, 32], strides = [1, 1]} : vector<8x128xf32> to vector<8x32xf32>
    %264 = vector.extract_strided_slice %255 {offsets = [0, 64], sizes = [8, 32], strides = [1, 1]} : vector<8x128xf32> to vector<8x32xf32>
    %265 = math.tanh %264 : vector<8x32xf32>
    %266 = arith.mulf %262, %250 : vector<8x32xf32>
    %267 = arith.mulf %261, %265 : vector<8x32xf32>
    %268 = arith.addf %266, %267 : vector<8x32xf32>
    %269 = math.tanh %268 : vector<8x32xf32>
    %270 = arith.mulf %263, %269 : vector<8x32xf32>
    %271 = vector.extract_strided_slice %160 {offsets = [48, 0], sizes = [8, 128], strides = [1, 1]} : vector<64x128xf32> to vector<8x128xf32>
    %cst_47 = arith.constant dense<0.000000e+00> : vector<8x128xf32>
    %272 = tpu.matmul %270, %156, %cst_47 {dimension_numbers = #tpu.dot_dimension_numbers<[1], [0], [0], [1], [0, 0, 1, 1], [], []>} : vector<8x32xf32>, vector<32x128xf32>, vector<8x128xf32> -> vector<8x128xf32>
    %273 = arith.addf %271, %272 : vector<8x128xf32>
    %274 = arith.negf %273 : vector<8x128xf32>
    %275 = math.exp %274 : vector<8x128xf32>
    %cst_48 = arith.constant 1.000000e+00 : f32
    %276 = vector.broadcast %cst_48 : f32 to vector<8x128xf32>
    %277 = arith.addf %276, %275 : vector<8x128xf32>
    %278 = arith.divf %276, %277 : vector<8x128xf32>
    %279 = vector.extract_strided_slice %278 {offsets = [0, 0], sizes = [8, 32], strides = [1, 1]} : vector<8x128xf32> to vector<8x32xf32>
    %280 = vector.extract_strided_slice %278 {offsets = [0, 32], sizes = [8, 32], strides = [1, 1]} : vector<8x128xf32> to vector<8x32xf32>
    %281 = vector.extract_strided_slice %278 {offsets = [0, 96], sizes = [8, 32], strides = [1, 1]} : vector<8x128xf32> to vector<8x32xf32>
    %282 = vector.extract_strided_slice %273 {offsets = [0, 64], sizes = [8, 32], strides = [1, 1]} : vector<8x128xf32> to vector<8x32xf32>
    %283 = math.tanh %282 : vector<8x32xf32>
    %284 = arith.mulf %280, %268 : vector<8x32xf32>
    %285 = arith.mulf %279, %283 : vector<8x32xf32>
    %286 = arith.addf %284, %285 : vector<8x32xf32>
    %287 = math.tanh %286 : vector<8x32xf32>
    %288 = arith.mulf %281, %287 : vector<8x32xf32>
    %289 = vector.extract_strided_slice %160 {offsets = [56, 0], sizes = [8, 128], strides = [1, 1]} : vector<64x128xf32> to vector<8x128xf32>
    %cst_49 = arith.constant dense<0.000000e+00> : vector<8x128xf32>
    %290 = tpu.matmul %288, %156, %cst_49 {dimension_numbers = #tpu.dot_dimension_numbers<[1], [0], [0], [1], [0, 0, 1, 1], [], []>} : vector<8x32xf32>, vector<32x128xf32>, vector<8x128xf32> -> vector<8x128xf32>
    %291 = arith.addf %289, %290 : vector<8x128xf32>
    %292 = arith.negf %291 : vector<8x128xf32>
    %293 = math.exp %292 : vector<8x128xf32>
    %cst_50 = arith.constant 1.000000e+00 : f32
    %294 = vector.broadcast %cst_50 : f32 to vector<8x128xf32>
    %295 = arith.addf %294, %293 : vector<8x128xf32>
    %296 = arith.divf %294, %295 : vector<8x128xf32>
    %297 = vector.extract_strided_slice %296 {offsets = [0, 0], sizes = [8, 32], strides = [1, 1]} : vector<8x128xf32> to vector<8x32xf32>
    %298 = vector.extract_strided_slice %296 {offsets = [0, 32], sizes = [8, 32], strides = [1, 1]} : vector<8x128xf32> to vector<8x32xf32>
    %299 = vector.extract_strided_slice %296 {offsets = [0, 96], sizes = [8, 32], strides = [1, 1]} : vector<8x128xf32> to vector<8x32xf32>
    %300 = vector.extract_strided_slice %291 {offsets = [0, 64], sizes = [8, 32], strides = [1, 1]} : vector<8x128xf32> to vector<8x32xf32>
    %301 = math.tanh %300 : vector<8x32xf32>
    %302 = arith.mulf %298, %286 : vector<8x32xf32>
    %303 = arith.mulf %297, %301 : vector<8x32xf32>
    %304 = arith.addf %302, %303 : vector<8x32xf32>
    %305 = math.tanh %304 : vector<8x32xf32>
    %306 = arith.mulf %299, %305 : vector<8x32xf32>
    %c0_51 = arith.constant 0 : index
    %c0_52 = arith.constant 0 : index
    %307 = vector.load %arg8[%c0_51, %c0_52] : memref<32x4xf32, #tpu.memory_space<vmem>>, vector<32x4xf32>
    %cst_53 = arith.constant dense<0.000000e+00> : vector<8x4xf32>
    %308 = tpu.matmul %306, %307, %cst_53 {dimension_numbers = #tpu.dot_dimension_numbers<[1], [0], [0], [1], [0, 0, 1, 1], [], []>} : vector<8x32xf32>, vector<32x4xf32>, vector<8x4xf32> -> vector<8x4xf32>
    %c0_54 = arith.constant 0 : index
    %c0_55 = arith.constant 0 : index
    %309 = vector.load %arg9[%c0_54, %c0_55] : memref<1x4xf32, #tpu.memory_space<vmem>>, vector<1x4xf32>
    %310 = vector.broadcast %309 : vector<1x4xf32> to vector<8x4xf32>
    %311 = arith.addf %308, %310 : vector<8x4xf32>
    %c0_56 = arith.constant 0 : index
    %c0_57 = arith.constant 0 : index
    %312 = vector.load %arg10[%c0_56, %c0_57] : memref<8x4xf32, #tpu.memory_space<vmem>>, vector<8x4xf32>
    tpu.vector_store %arg10[%c0_56, %c0_57], %311 {strides = array<i32>} : memref<8x4xf32, #tpu.memory_space<vmem>>, vector<8x4xf32>,
    return
  }
  func.func @transform_0(%arg0: i32) -> (i32, i32, i32) {
    %c0_i32 = arith.constant 0 : i32
    %c0_i32_0 = arith.constant 0 : i32
    %c0_i32_1 = arith.constant 0 : i32
    return %arg0, %c0_i32, %c0_i32_0 : i32, i32, i32
  }
  func.func @transform_1(%arg0: i32) -> (i32, i32) {
    %c0_i32 = arith.constant 0 : i32
    %c0_i32_0 = arith.constant 0 : i32
    %c0_i32_1 = arith.constant 0 : i32
    return %c0_i32, %c0_i32_0 : i32, i32
  }
  func.func @transform_2(%arg0: i32) -> (i32, i32) {
    %c0_i32 = arith.constant 0 : i32
    %c0_i32_0 = arith.constant 0 : i32
    %c0_i32_1 = arith.constant 0 : i32
    return %c0_i32, %c0_i32_0 : i32, i32
  }
  func.func @transform_3(%arg0: i32) -> (i32, i32) {
    %c0_i32 = arith.constant 0 : i32
    %c0_i32_0 = arith.constant 0 : i32
    %c0_i32_1 = arith.constant 0 : i32
    return %c0_i32, %c0_i32_0 : i32, i32
  }
  func.func @transform_4(%arg0: i32) -> (i32, i32) {
    %c0_i32 = arith.constant 0 : i32
    %c0_i32_0 = arith.constant 0 : i32
    %c0_i32_1 = arith.constant 0 : i32
    return %c0_i32, %c0_i32_0 : i32, i32
  }
  func.func @transform_5(%arg0: i32) -> (i32, i32) {
    %c0_i32 = arith.constant 0 : i32
    %c0_i32_0 = arith.constant 0 : i32
    %c0_i32_1 = arith.constant 0 : i32
    return %c0_i32, %c0_i32_0 : i32, i32
  }
  func.func @transform_6(%arg0: i32) -> (i32, i32) {
    %c0_i32 = arith.constant 0 : i32
    %c0_i32_0 = arith.constant 0 : i32
    %c0_i32_1 = arith.constant 0 : i32
    return %c0_i32, %c0_i32_0 : i32, i32
  }
  func.func @transform_7(%arg0: i32) -> (i32, i32) {
    %c0_i32 = arith.constant 0 : i32
    %c0_i32_0 = arith.constant 0 : i32
    %c0_i32_1 = arith.constant 0 : i32
    return %c0_i32, %c0_i32_0 : i32, i32
  }
  func.func @transform_8(%arg0: i32) -> (i32, i32) {
    %c0_i32 = arith.constant 0 : i32
    %c0_i32_0 = arith.constant 0 : i32
    %c0_i32_1 = arith.constant 0 : i32
    return %c0_i32, %c0_i32_0 : i32, i32
  }
  func.func @transform_9(%arg0: i32) -> (i32, i32) {
    %c0_i32 = arith.constant 0 : i32
    %c0_i32_0 = arith.constant 0 : i32
    return %arg0, %c0_i32 : i32, i32
  }
}

</mosaic_0001>

<bundles_post_ra>
// kernel: lstm_forward.1
= control target key start
LH: loop header
LB: loop body
LE: loop exit
PB: predicated region body
PF: predicated region fallthrough
CT: control target
= control target key end

     0   :  { %v2506_v0 = vmov 0.0   ;;  %vm2507_vm0 = vmmov 0   ;;  %vm53_vm1 = vcmask 130048   ;;  %s2508_s25 = smov 64   ;;  %vm183_vm2 = vcmask 261120   ;;  %s2996_s1 = inlined_call_operand.vmem [shape: f32[16,128], index: 1, kind: input, shape index: {}]   ;;  %s2997_s2 = inlined_call_operand.vmem [shape: f32[32,128], index: 2, kind: input, shape index: {}]   ;;  %s2998_s0 = inlined_call_operand.vmem [shape: f32[1,64,16], index: 0, kind: input, shape index: {}]   ;;  %s2999_s3 = inlined_call_operand.vmem [shape: f32[1,128], index: 3, kind: input, shape index: {}]   ;;  %s3000_s4 = inlined_call_operand.vmem [shape: f32[32,128], index: 4, kind: input, shape index: {}]   ;;  %s3001_s5 = inlined_call_operand.vmem [shape: f32[32,128], index: 5, kind: input, shape index: {}]   ;;  %s3002_s6 = inlined_call_operand.vmem [shape: f32[1,128], index: 6, kind: input, shape index: {}]   ;;  %s3003_s7 = inlined_call_operand.vmem [shape: f32[32,4], index: 7, kind: input, shape index: {}]   ;;  %s3004_s8 = inlined_call_operand.vmem [shape: f32[1,4], index: 8, kind: input, shape index: {}]   ;;  %s3005_s9 = inlined_call_operand.vmem [shape: f32[8,4], index: 9, kind: output, shape index: {}]  }
   0x1   :  { %2167 = vmatprep.subr.mxu1 %v2506_v0  ;;  %v41_v1 = vld [vmem:[%s2996_s1 + $0x8] sm:$0xff]  ;;  %v2567_v2 = vld [vmem:[%s2997_s2 + $0x18] sm:$0xff]  ;;  %v40_v3 = vld [vmem:[%s2996_s1] sm:$0xff]  ;;  %2175 = vmatprep.mubr.msk.f32.mxu1 %vm2507_vm0, %v2506_v0  ;;  %vm1988_vm3 = vcmask 31744  }
   0x2   :  { %2151 = vmatprep.subr.mxu0 %v41_v1  ;;  %2168 = vmatpush3.msra.mxu1 %v2567_v2  ;;  %v2578_v4 = vld [vmem:[%s2997_s2 + $0x10] sm:$0xff]  ;;  %v32_v5 = vld [vmem:[%s2998_s0] sm:$0xff]  ;;  %v33_v6 = vld [vmem:[%s2998_s0 + $0x8] sm:$0xff] }
   0x3   :  { %2152 = vmatpush3.msra.mxu0 %v41_v1  ;;  %2169 = vmatprep.subr.mxu1 %v2506_v0  ;;  %v2591_v7 = vld [vmem:[%s2997_s2 + $0x8] sm:$0xff]  ;;  %v2599_v8 = vld [vmem:[%s2997_s2] sm:$0xff]  ;;  %v34_v44 = vld [vmem:[%s2998_s0 + $0x10] sm:$0xff] }
   0x4   :  { %2153 = vmatprep.subr.mxu0 %v40_v3  ;;  %2170 = vmatpush3.msra.mxu1 %v2578_v4  ;;  %v2628_v10 = vld [vmem:[%s2999_s3] ss:$0 sm:$0xff]  ;;  %s2509_s3 = smov 32   ;;  %v35_v45 = vld [vmem:[%s2998_s0 + $0x18] sm:$0xff]  ;;  %v37_v47 = vld [vmem:[%s2998_s0 + $0x28] sm:$0xff] }
   0x5   :  { %2154 = vmatpush3.msra.mxu0 %v40_v3  ;;  %2155 = vmatprep.mubr.msk.f32.mxu0 %vm53_vm1, %v32_v5  ;;  %v36_v46 = vld [vmem:[%s2998_s0 + $0x20] sm:$0xff]  ;;  %v38_v48 = vld [vmem:[%s2998_s0 + $0x30] sm:$0xff]  ;;  %v39_v49 = vld [vmem:[%s2998_s0 + $0x38] sm:$0xff] }
   0x6   :  { %2171 = vmatprep.subr.mxu1 %v2506_v0  ;;  %2156 = vmatmul.mubr.msk.f32.vlgmr.msra.gmra.mxu0 %vm53_vm1, %v33_v6 }
   0x7   :  { %2172 = vmatpush3.msra.mxu1 %v2591_v7  ;;  %2189 = vmatprep.subr.mxu0 %v2506_v0 }
   0x8   :  { %2173 = vmatprep.subr.mxu1 %v2506_v0  ;;  %2190 = vmatpush3.msra.mxu0 %v2567_v2 }
   0x9   :  { %2174 = vmatpush3.msra.mxu1 %v2599_v8  ;;  %2191 = vmatprep.subr.mxu0 %v2506_v0 }
   0xa   :  { %2176 = vmatmul.mubr.f32.vlgmr.msra.gmra.mxu1 %v2506_v0  ;;  %2178 = vmatprep.subr.mxu1 %v2506_v0 }
   0xb   :  { %2179 = vmatpush3.msra.mxu1 %v2567_v2  ;;  %2186 = vmatprep.mubr.msk.f32.mxu1 %vm2507_vm0, %v2506_v0 }
   0xc   :  { %2180 = vmatprep.subr.mxu1 %v2506_v0  ;;  %2192 = vmatpush3.msra.mxu0 %v2578_v4 }
   0xd   :  { %2181 = vmatpush3.msra.mxu1 %v2578_v4  ;;  %2193 = vmatprep.subr.mxu0 %v2506_v0 }
   0xe   :  { %2182 = vmatprep.subr.mxu1 %v2506_v0  ;;  %2194 = vmatpush3.msra.mxu0 %v2591_v7 }
   0xf   :  { %2183 = vmatpush3.msra.mxu1 %v2591_v7  ;;  %2195 = vmatprep.subr.mxu0 %v2506_v0 }
  0x10   :  { %2184 = vmatprep.subr.mxu1 %v2506_v0  ;;  %2196 = vmatpush3.msra.mxu0 %v2599_v8 }
  0x11   :  { %2185 = vmatpush3.msra.mxu1 %v2599_v8  ;;  %2211 = vmatprep.subr.mxu0 %v2506_v0 }
  0x12   :  { %2200 = vmatprep.subr.mxu1 %v2506_v0  ;;  %2158 = vmatprep.mubr.msk.f32.mxu0 %vm53_vm1, %v34_v44 }
  0x13   :  { %2159 = vmatmul.mubr.msk.f32.gmra.mxu0 %vm53_vm1, %v35_v45 }
  0x14   :  { %2161 = vmatprep.mubr.msk.f32.mxu0 %vm53_vm1, %v36_v46 }
  0x17   :  { %2162 = vmatmul.mubr.msk.f32.gmra.mxu0 %vm53_vm1, %v37_v47 }
  0x18   :  { %2164 = vmatprep.mubr.msk.f32.mxu0 %vm53_vm1, %v38_v48 }
  0x1b   :  { %2165 = vmatmul.mubr.msk.f32.gmra.mxu0 %vm53_vm1, %v39_v49 }
  0x1c   :  { %2197 = vmatprep.mubr.msk.f32.mxu0 %vm2507_vm0, %v2506_v0 }
  0xc6   :  { %v2157_v9 = vpop.f32.mrf.mxu0 }
  0xc7   :  { %v150_v30 = vadd.f32 %v2157_v9, %v2628_v10 }
  0xc8   :  { %v144_v11 = vpop.f32.mrf.mxu0 }
  0xc9   :  { %v145_v12 = vadd.f32 %v2628_v10, %v144_v11 }
  0xca   :  { %v253_v13 = vpop.f32.mrf.mxu1 }
  0xcb   :  { %v257_v14 = vadd.f32 %v253_v13, %v145_v12 }
  0xcc   :  { %v2177_v15 = vpop.f32.mrf.mxu1 }
  0xcd   :  { %2378 = vtanh.f32 %v257_v14  ;;  %v2003_v17 = vmul.f32 -1.442695, %v257_v14 }
  0xcf   :  { %2380 = vpow2.f32 %v2003_v17 }
  0xd3   :  { %v2160_v54 = vpop.f32.mrf.mxu0 }
  0xd5   :  { %v154_v55 = vpop.f32.mrf.mxu0 }
  0xd6   :  { %v155_v60 = vadd.f32 %v2628_v10, %v154_v55 }
  0xd7   :  { %v2694_v56 = vpop.f32.mrf.mxu0 }
  0xd9   :  { %v2696_v57 = vpop.f32.mrf.mxu0 }
  0xda   :  { %v2379_v16 = vpop.eup %2378 }
  0xdb   :  { %267 = vrot.lane.b32.xlu0 %v2379_v16, %s2508_s25  ;;  %v2698_v58 = vpop.f32.mrf.mxu0 }
  0xdc   :  { %v2381_v18 = vpop.eup %2380 }
  0xdd   :  { %v261_v19 = vadd.f32 1.0, %v2381_v18  ;;  %v2700_v59 = vpop.f32.mrf.mxu0 }
  0xdf   :  { %2382 = vrcp.f32 %v261_v19 }
  0xec   :  { %v2383_v20 = vpop.eup %2382 }
  0xed   :  { %v265_v23 = vmul.f32 0.0, %v2383_v20 }
 0x14d   :  { %v268_v21 = vpop.permute.xlu0 %267 }
 0x14e   :  { %v270_v22 = vmul.f32 %v2383_v20, %v268_v21 }
 0x150   :  { %272 = vrot.lane.b32.xlu0 %v270_v22, %s2509_s3 }
 0x1c2   :  { %v273_v24 = vpop.permute.xlu0 %272 }
 0x1c3   :  { %v275_v25 = vadd.f32 %v273_v24, %v265_v23 }
 0x1c5   :  { %2384 = vtanh.f32 %v275_v25 }
 0x1d2   :  { %v2385_v26 = vpop.eup %2384 }
 0x1d3   :  { %278 = vrot.lane.b32.xlu1 %v2385_v26, %s2508_s25 }
 0x245   :  { %v279_v27 = vpop.permute.xlu1 %278 }
 0x246   :  { %v281_v28 = vmul.f32 %v2383_v20, %v279_v27  ;;  %v160_v20 = vadd.f32 %v2160_v54, %v2628_v10 }
 0x248   :  { %283 = vrot.lane.b32.xlu1 %v281_v28, %s2509_s3 }
 0x2ba   :  { %v2635_v29 = vpop.permute.xlu1 %283 }
 0x2bb   :  { %2187 = vmatmul.mubr.msk.f32.vlgmr.msra.gmra.mxu1 %vm183_vm2, %v2635_v29 }
 0x2bc   :  { %2201 = vmatpush3.msra.mxu1 %v2567_v2  ;;  %2208 = vmatprep.mubr.msk.f32.mxu1 %vm2507_vm0, %v2506_v0 }
 0x2bd   :  { %2202 = vmatprep.subr.mxu1 %v2506_v0 }
 0x2be   :  { %2203 = vmatpush3.msra.mxu1 %v2578_v4 }
 0x2bf   :  { %2204 = vmatprep.subr.mxu1 %v2506_v0 }
 0x2c0   :  { %2205 = vmatpush3.msra.mxu1 %v2591_v7 }
 0x2c1   :  { %2206 = vmatprep.subr.mxu1 %v2506_v0 }
 0x2c2   :  { %2207 = vmatpush3.msra.mxu1 %v2599_v8 }
 0x2c3   :  { %2222 = vmatprep.subr.mxu1 %v2506_v0 }
 0x37b   :  { %v353_v31 = vpop.f32.mrf.mxu1 }
 0x37c   :  { %v357_v32 = vadd.f32 %v353_v31, %v150_v30 }
 0x37d   :  { %v2188_v33 = vpop.f32.mrf.mxu1 }
 0x37e   :  { %2386 = vtanh.f32 %v357_v32  ;;  %v2005_v35 = vmul.f32 -1.442695, %v357_v32 }
 0x380   :  { %2388 = vpow2.f32 %v2005_v35 }
 0x38b   :  { %v2387_v34 = vpop.eup %2386 }
 0x38c   :  { %367 = vrot.lane.b32.xlu0 %v2387_v34, %s2508_s25 }
 0x38d   :  { %v2389_v36 = vpop.eup %2388 }
 0x38e   :  { %v361_v37 = vadd.f32 1.0, %v2389_v36 }
 0x390   :  { %2390 = vrcp.f32 %v361_v37 }
 0x39d   :  { %v2391_v38 = vpop.eup %2390 }
 0x39e   :  { %v365_v41 = vmul.f32 %v2391_v38, %v275_v25 }
 0x3fe   :  { %v368_v39 = vpop.permute.xlu0 %367 }
 0x3ff   :  { %v370_v40 = vmul.f32 %v2391_v38, %v368_v39  ;;  %v165_v39 = vadd.f32 %v2628_v10, %v2696_v57 }
 0x401   :  { %372 = vrot.lane.b32.xlu1 %v370_v40, %s2509_s3 }
 0x473   :  { %v373_v42 = vpop.permute.xlu1 %372 }
 0x474   :  { %v375_v43 = vadd.f32 %v373_v42, %v365_v41 }
 0x476   :  { %2392 = vtanh.f32 %v375_v43 }
 0x483   :  { %v2393_v50 = vpop.eup %2392 }
 0x484   :  { %378 = vrot.lane.b32.xlu0 %v2393_v50, %s2508_s25 }
 0x4f6   :  { %v379_v51 = vpop.permute.xlu0 %378 }
 0x4f7   :  { %v381_v52 = vmul.f32 %v2391_v38, %v379_v51 }
 0x4f9   :  { %383 = vrot.lane.b32.xlu1 %v381_v52, %s2509_s3 }
 0x56b   :  { %v2680_v53 = vpop.permute.xlu1 %383 }
 0x56c   :  { %2198 = vmatmul.mubr.msk.f32.vlgmr.msra.gmra.mxu0 %vm183_vm2, %v2680_v53 }
 0x56d   :  { %2212 = vmatpush3.msra.mxu0 %v2567_v2  ;;  %2219 = vmatprep.mubr.msk.f32.mxu0 %vm2507_vm0, %v2506_v0 }
 0x56e   :  { %2213 = vmatprep.subr.mxu0 %v2506_v0 }
 0x56f   :  { %2214 = vmatpush3.msra.mxu0 %v2578_v4 }
 0x570   :  { %2215 = vmatprep.subr.mxu0 %v2506_v0 }
 0x571   :  { %2216 = vmatpush3.msra.mxu0 %v2591_v7 }
 0x572   :  { %2217 = vmatprep.subr.mxu0 %v2506_v0 }
 0x573   :  { %2218 = vmatpush3.msra.mxu0 %v2599_v8 }
 0x574   :  { %2233 = vmatprep.subr.mxu0 %v2506_v0 }
 0x62c   :  { %v453_v61 = vpop.f32.mrf.mxu0 }
 0x62d   :  { %v457_v62 = vadd.f32 %v453_v61, %v155_v60 }
 0x62e   :  { %v2199_v63 = vpop.f32.mrf.mxu0 }
 0x62f   :  { %2394 = vtanh.f32 %v457_v62  ;;  %v2007_v3 = vmul.f32 -1.442695, %v457_v62 }
 0x631   :  { %2396 = vpow2.f32 %v2007_v3 }
 0x63c   :  { %v2395_v1 = vpop.eup %2394 }
 0x63d   :  { %467 = vrot.lane.b32.xlu0 %v2395_v1, %s2508_s25 }
 0x63e   :  { %v2397_v5 = vpop.eup %2396 }
 0x63f   :  { %v461_v6 = vadd.f32 1.0, %v2397_v5 }
 0x641   :  { %2398 = vrcp.f32 %v461_v6 }
 0x64e   :  { %v2399_v9 = vpop.eup %2398 }
 0x64f   :  { %v465_v13 = vmul.f32 %v2399_v9, %v375_v43 }
 0x6af   :  { %v468_v11 = vpop.permute.xlu0 %467 }
 0x6b0   :  { %v470_v12 = vmul.f32 %v2399_v9, %v468_v11 }
 0x6b2   :  { %472 = vrot.lane.b32.xlu1 %v470_v12, %s2509_s3  ;;  %v985_v12 = vld [vmem:[%s3000_s4 + $0x18] sm:$0xff] }
 0x724   :  { %v473_v14 = vpop.permute.xlu1 %472 }
 0x725   :  { %v475_v15 = vadd.f32 %v473_v14, %v465_v13 }
 0x727   :  { %2400 = vtanh.f32 %v475_v15 }
 0x734   :  { %v2401_v16 = vpop.eup %2400 }
 0x735   :  { %478 = vrot.lane.b32.xlu0 %v2401_v16, %s2508_s25 }
 0x7a7   :  { %v479_v17 = vpop.permute.xlu0 %478 }
 0x7a8   :  { %v481_v18 = vmul.f32 %v2399_v9, %v479_v17  ;;  %v984_v17 = vld [vmem:[%s3000_s4 + $0x10] sm:$0xff] }
 0x7aa   :  { %483 = vrot.lane.b32.xlu1 %v481_v18, %s2509_s3  ;;  %v983_v18 = vld [vmem:[%s3000_s4 + $0x8] sm:$0xff] }
 0x81c   :  { %v2707_v19 = vpop.permute.xlu1 %483 }
 0x81d   :  { %2209 = vmatmul.mubr.msk.f32.vlgmr.msra.gmra.mxu1 %vm183_vm2, %v2707_v19 }
 0x81e   :  { %2223 = vmatpush3.msra.mxu1 %v2567_v2  ;;  %2230 = vmatprep.mubr.msk.f32.mxu1 %vm2507_vm0, %v2506_v0 }
 0x81f   :  { %2224 = vmatprep.subr.mxu1 %v2506_v0 }
 0x820   :  { %2225 = vmatpush3.msra.mxu1 %v2578_v4 }
 0x821   :  { %2226 = vmatprep.subr.mxu1 %v2506_v0 }
 0x822   :  { %2227 = vmatpush3.msra.mxu1 %v2591_v7 }
 0x823   :  { %2228 = vmatprep.subr.mxu1 %v2506_v0 }
 0x824   :  { %2229 = vmatpush3.msra.mxu1 %v2599_v8 }
 0x825   :  { %2244 = vmatprep.subr.mxu1 %v2506_v0 }
 0x8dd   :  { %v553_v21 = vpop.f32.mrf.mxu1 }
 0x8de   :  { %v557_v22 = vadd.f32 %v553_v21, %v160_v20  ;;  %v982_v20 = vld [vmem:[%s3000_s4] sm:$0xff] }
 0x8df   :  { %v2210_v23 = vpop.f32.mrf.mxu1 }
 0x8e0   :  { %2402 = vtanh.f32 %v557_v22  ;;  %v2009_v25 = vmul.f32 -1.442695, %v557_v22 }
 0x8e2   :  { %2404 = vpow2.f32 %v2009_v25 }
 0x8ed   :  { %v2403_v24 = vpop.eup %2402 }
 0x8ee   :  { %567 = vrot.lane.b32.xlu0 %v2403_v24, %s2508_s25 }
 0x8ef   :  { %v2405_v26 = vpop.eup %2404 }
 0x8f0   :  { %v561_v27 = vadd.f32 1.0, %v2405_v26 }
 0x8f2   :  { %2406 = vrcp.f32 %v561_v27 }
 0x8ff   :  { %v2407_v28 = vpop.eup %2406 }
 0x900   :  { %v565_v32 = vmul.f32 %v2407_v28, %v475_v15 }
 0x960   :  { %v568_v30 = vpop.permute.xlu0 %567 }
 0x961   :  { %v570_v31 = vmul.f32 %v2407_v28, %v568_v30 }
 0x963   :  { %572 = vrot.lane.b32.xlu1 %v570_v31, %s2509_s3 }
 0x9d5   :  { %v573_v33 = vpop.permute.xlu1 %572 }
 0x9d6   :  { %v575_v34 = vadd.f32 %v573_v33, %v565_v32  ;;  %v2797_v33 = vld [vmem:[%s3001_s5 + $0x18] sm:$0xff] }
 0x9d8   :  { %2408 = vtanh.f32 %v575_v34 }
 0x9e5   :  { %v2409_v35 = vpop.eup %2408 }
 0x9e6   :  { %578 = vrot.lane.b32.xlu0 %v2409_v35, %s2508_s25  ;;  %v2810_v35 = vld [vmem:[%s3001_s5 + $0x8] sm:$0xff] }
 0xa58   :  { %v579_v36 = vpop.permute.xlu0 %578 }
 0xa59   :  { %v581_v37 = vmul.f32 %v2407_v28, %v579_v36  ;;  %v2817_v36 = vld [vmem:[%s3001_s5] sm:$0xff] }
 0xa5b   :  { %583 = vrot.lane.b32.xlu1 %v581_v37, %s2509_s3 }
 0xacd   :  { %v2726_v38 = vpop.permute.xlu1 %583 }
 0xace   :  { %2220 = vmatmul.mubr.msk.f32.vlgmr.msra.gmra.mxu0 %vm183_vm2, %v2726_v38 }
 0xacf   :  { %2234 = vmatpush3.msra.mxu0 %v2567_v2  ;;  %2241 = vmatprep.mubr.msk.f32.mxu0 %vm2507_vm0, %v2506_v0 }
 0xad0   :  { %2235 = vmatprep.subr.mxu0 %v2506_v0 }
 0xad1   :  { %2236 = vmatpush3.msra.mxu0 %v2578_v4 }
 0xad2   :  { %2237 = vmatprep.subr.mxu0 %v2506_v0 }
 0xad3   :  { %2238 = vmatpush3.msra.mxu0 %v2591_v7 }
 0xad4   :  { %2239 = vmatprep.subr.mxu0 %v2506_v0 }
 0xad5   :  { %2240 = vmatpush3.msra.mxu0 %v2599_v8 }
 0xad6   :  { %2255 = vmatprep.subr.mxu0 %v985_v12 }
 0xb8e   :  { %v653_v40 = vpop.f32.mrf.mxu0 }
 0xb8f   :  { %v657_v41 = vadd.f32 %v653_v40, %v165_v39  ;;  %v180_v40 = vadd.f32 %v2698_v58, %v2628_v10 }
 0xb90   :  { %v2221_v42 = vpop.f32.mrf.mxu0 }
 0xb91   :  { %2410 = vtanh.f32 %v657_v41  ;;  %v2011_v44 = vmul.f32 -1.442695, %v657_v41 }
 0xb93   :  { %2412 = vpow2.f32 %v2011_v44 }
 0xb9e   :  { %v2411_v43 = vpop.eup %2410 }
 0xb9f   :  { %667 = vrot.lane.b32.xlu0 %v2411_v43, %s2508_s25 }
 0xba0   :  { %v2413_v45 = vpop.eup %2412 }
 0xba1   :  { %v661_v46 = vadd.f32 1.0, %v2413_v45 }
 0xba3   :  { %2414 = vrcp.f32 %v661_v46  ;;  %v2853_v46 = vld [vmem:[%s3002_s6] ss:$0 sm:$0xff] }
 0xbb0   :  { %v2415_v47 = vpop.eup %2414 }
 0xbb1   :  { %v665_v50 = vmul.f32 %v2415_v47, %v575_v34  ;;  %v2803_v34 = vld [vmem:[%s3001_s5 + $0x10] sm:$0xff] }
 0xc11   :  { %v668_v48 = vpop.permute.xlu0 %667 }
 0xc12   :  { %v670_v49 = vmul.f32 %v2415_v47, %v668_v48 }
 0xc14   :  { %672 = vrot.lane.b32.xlu1 %v670_v49, %s2509_s3 }
 0xc86   :  { %v673_v51 = vpop.permute.xlu1 %672 }
 0xc87   :  { %v675_v52 = vadd.f32 %v673_v51, %v665_v50 }
 0xc89   :  { %2416 = vtanh.f32 %v675_v52 }
 0xc96   :  { %v2417_v54 = vpop.eup %2416 }
 0xc97   :  { %678 = vrot.lane.b32.xlu0 %v2417_v54, %s2508_s25 }
 0xd09   :  { %v679_v55 = vpop.permute.xlu0 %678 }
 0xd0a   :  { %v681_v57 = vmul.f32 %v2415_v47, %v679_v55 }
 0xd0c   :  { %683 = vrot.lane.b32.xlu1 %v681_v57, %s2509_s3 }
 0xd7e   :  { %v684_v60 = vpop.permute.xlu1 %683 }
 0xd7f   :  { %2231 = vmatmul.mubr.msk.f32.vlgmr.msra.gmra.mxu1 %vm183_vm2, %v684_v60 }
 0xd80   :  { %2245 = vmatpush3.msra.mxu1 %v2567_v2  ;;  %2252 = vmatprep.mubr.msk.f32.mxu1 %vm2507_vm0, %v2506_v0  ;;  %v170_v2 = vadd.f32 %v2694_v56, %v2628_v10 }
 0xd81   :  { %2246 = vmatprep.subr.mxu1 %v2506_v0 }
 0xd82   :  { %2247 = vmatpush3.msra.mxu1 %v2578_v4 }
 0xd83   :  { %2248 = vmatprep.subr.mxu1 %v2506_v0 }
 0xd84   :  { %2249 = vmatpush3.msra.mxu1 %v2591_v7 }
 0xd85   :  { %2250 = vmatprep.subr.mxu1 %v2506_v0 }
 0xd86   :  { %2251 = vmatpush3.msra.mxu1 %v2599_v8 }
 0xd87   :  { %2275 = vmatprep.subr.mxu1 %v2506_v0 }
 0xe3f   :  { %v753_v61 = vpop.f32.mrf.mxu1 }
 0xe40   :  { %v757_v62 = vadd.f32 %v753_v61, %v170_v2 }
 0xe41   :  { %v2232_v63 = vpop.f32.mrf.mxu1 }
 0xe42   :  { %2418 = vtanh.f32 %v757_v62  ;;  %v2013_v4 = vmul.f32 -1.442695, %v757_v62 }
 0xe44   :  { %2420 = vpow2.f32 %v2013_v4 }
 0xe4f   :  { %v2419_v1 = vpop.eup %2418 }
 0xe50   :  { %767 = vrot.lane.b32.xlu0 %v2419_v1, %s2508_s25 }
 0xe51   :  { %v2421_v3 = vpop.eup %2420 }
 0xe52   :  { %v761_v7 = vadd.f32 1.0, %v2421_v3 }
 0xe54   :  { %2422 = vrcp.f32 %v761_v7 }
 0xe61   :  { %v2423_v5 = vpop.eup %2422 }
 0xe62   :  { %v765_v9 = vmul.f32 %v2423_v5, %v675_v52 }
 0xec2   :  { %v768_v6 = vpop.permute.xlu0 %767 }
 0xec3   :  { %v770_v8 = vmul.f32 %v2423_v5, %v768_v6 }
 0xec5   :  { %772 = vrot.lane.b32.xlu1 %v770_v8, %s2509_s3 }
 0xf37   :  { %v773_v11 = vpop.permute.xlu1 %772 }
 0xf38   :  { %v775_v56 = vadd.f32 %v773_v11, %v765_v9 }
 0xf3a   :  { %2424 = vtanh.f32 %v775_v56 }
 0xf47   :  { %v2425_v13 = vpop.eup %2424 }
 0xf48   :  { %778 = vrot.lane.b32.xlu0 %v2425_v13, %s2508_s25 }
 0xfba   :  { %v779_v14 = vpop.permute.xlu0 %778 }
 0xfbb   :  { %v781_v15 = vmul.f32 %v2423_v5, %v779_v14 }
 0xfbd   :  { %783 = vrot.lane.b32.xlu1 %v781_v15, %s2509_s3 }
0x102f   :  { %v784_v16 = vpop.permute.xlu1 %783 }
0x1030   :  { %2242 = vmatmul.mubr.msk.f32.vlgmr.msra.gmra.mxu0 %vm183_vm2, %v784_v16 }
0x1031   :  { %2256 = vmatpush3.msra.mxu0 %v985_v12  ;;  %2263 = vmatprep.mubr.msk.f32.mxu0 %vm183_vm2, %v2635_v29  ;;  %v175_v29 = vadd.f32 %v2628_v10, %v2700_v59 }
0x1032   :  { %2257 = vmatprep.subr.mxu0 %v984_v17 }
0x1033   :  { %2258 = vmatpush3.msra.mxu0 %v984_v17 }
0x1034   :  { %2259 = vmatprep.subr.mxu0 %v983_v18 }
0x1035   :  { %2260 = vmatpush3.msra.mxu0 %v983_v18 }
0x1036   :  { %2261 = vmatprep.subr.mxu0 %v982_v20 }
0x1037   :  { %2262 = vmatpush3.msra.mxu0 %v982_v20 }
0x1038   :  { %2264 = vmatmul.mubr.msk.f32.vlgmr.msra.gmra.mxu0 %vm183_vm2, %v2680_v53  ;;  %2297 = vmatprep.subr.mxu0 %v2506_v0 }
0x1039   :  { %2266 = vmatprep.mubr.msk.f32.mxu0 %vm183_vm2, %v2707_v19  ;;  %2298 = vmatpush3.msra.mxu0 %v2797_v33 }
0x103a   :  { %2299 = vmatprep.subr.mxu0 %v2506_v0 }
0x103b   :  { %2300 = vmatpush3.msra.mxu0 %v2803_v34 }
0x103c   :  { %2267 = vmatmul.mubr.msk.f32.gmra.mxu0 %vm183_vm2, %v2726_v38  ;;  %2301 = vmatprep.subr.mxu0 %v2506_v0 }
0x103d   :  { %2269 = vmatprep.mubr.msk.f32.mxu0 %vm183_vm2, %v684_v60  ;;  %2302 = vmatpush3.msra.mxu0 %v2810_v35 }
0x103e   :  { %2303 = vmatprep.subr.mxu0 %v2506_v0 }
0x103f   :  { %2304 = vmatpush3.msra.mxu0 %v2817_v36 }
0x1040   :  { %2270 = vmatmul.mubr.msk.f32.gmra.mxu0 %vm183_vm2, %v784_v16  ;;  %2319 = vmatprep.subr.mxu0 %v2506_v0 }
0x10f0   :  { %v853_v21 = vpop.f32.mrf.mxu0 }
0x10f1   :  { %v857_v22 = vadd.f32 %v853_v21, %v175_v29 }
0x10f2   :  { %v2243_v23 = vpop.f32.mrf.mxu0 }
0x10f3   :  { %2426 = vtanh.f32 %v857_v22  ;;  %v2015_v24 = vmul.f32 -1.442695, %v857_v22 }
0x10f5   :  { %2428 = vpow2.f32 %v2015_v24 }
0x10f8   :  { %v2848_v41 = vpop.f32.mrf.mxu0 }
0x10f9   :  { %v1074_v17 = vadd.f32 %v2848_v41, %v2853_v46 }
0x10fa   :  { %v1068_v45 = vpop.f32.mrf.mxu0 }
0x10fb   :  { %v1069_v47 = vadd.f32 %v2853_v46, %v1068_v45 }
0x1100   :  { %v2427_v53 = vpop.eup %2426 }
0x1101   :  { %867 = vrot.lane.b32.xlu0 %v2427_v53, %s2508_s25 }
0x1102   :  { %v2429_v19 = vpop.eup %2428 }
0x1103   :  { %v861_v25 = vadd.f32 1.0, %v2429_v19 }
0x1105   :  { %2430 = vrcp.f32 %v861_v25 }
0x1112   :  { %v2431_v26 = vpop.eup %2430 }
0x1113   :  { %v865_v30 = vmul.f32 %v2431_v26, %v775_v56 }
0x1173   :  { %v868_v27 = vpop.permute.xlu0 %867 }
0x1174   :  { %v870_v28 = vmul.f32 %v2431_v26, %v868_v27 }
0x1176   :  { %872 = vrot.lane.b32.xlu1 %v870_v28, %s2509_s3 }
0x11e8   :  { %v873_v31 = vpop.permute.xlu1 %872 }
0x11e9   :  { %v2790_v59 = vadd.f32 %v873_v31, %v865_v30 }
0x11eb   :  { %2432 = vtanh.f32 %v2790_v59 }
0x11f8   :  { %v2433_v32 = vpop.eup %2432 }
0x11f9   :  { %878 = vrot.lane.b32.xlu0 %v2433_v32, %s2508_s25 }
0x126b   :  { %v879_v37 = vpop.permute.xlu0 %878 }
0x126c   :  { %v881_v38 = vmul.f32 %v2431_v26, %v879_v37 }
0x126e   :  { %883 = vrot.lane.b32.xlu1 %v881_v38, %s2509_s3  ;;  %v2268_v38 = vpop.f32.mrf.mxu0 }
0x12e0   :  { %v884_v39 = vpop.permute.xlu1 %883 }
0x12e1   :  { %2253 = vmatmul.mubr.msk.f32.vlgmr.msra.gmra.mxu1 %vm183_vm2, %v884_v39  ;;  %2272 = vmatprep.mubr.msk.f32.mxu0 %vm183_vm2, %v884_v39  ;;  %v1078_v39 = vpop.f32.mrf.mxu0 }
0x12e2   :  { %2276 = vmatpush3.msra.mxu1 %v2797_v33  ;;  %2283 = vmatprep.mubr.msk.f32.mxu1 %vm2507_vm0, %v2506_v0 }
0x12e3   :  { %2277 = vmatprep.subr.mxu1 %v2506_v0 }
0x12e4   :  { %2278 = vmatpush3.msra.mxu1 %v2803_v34 }
0x12e5   :  { %2279 = vmatprep.subr.mxu1 %v2506_v0 }
0x12e6   :  { %2280 = vmatpush3.msra.mxu1 %v2810_v35 }
0x12e7   :  { %2281 = vmatprep.subr.mxu1 %v2506_v0 }
0x12e8   :  { %2282 = vmatpush3.msra.mxu1 %v2817_v36 }
0x12e9   :  { %2284 = vmatmul.mubr.f32.vlgmr.msra.gmra.mxu1 %v2506_v0  ;;  %2286 = vmatprep.subr.mxu1 %v2506_v0 }
0x12ea   :  { %2287 = vmatpush3.msra.mxu1 %v2797_v33  ;;  %2294 = vmatprep.mubr.msk.f32.mxu1 %vm2507_vm0, %v2506_v0 }
0x12eb   :  { %2288 = vmatprep.subr.mxu1 %v2506_v0 }
0x12ec   :  { %2289 = vmatpush3.msra.mxu1 %v2803_v34 }
0x12ed   :  { %2290 = vmatprep.subr.mxu1 %v2506_v0 }
0x12ee   :  { %2291 = vmatpush3.msra.mxu1 %v2810_v35 }
0x12ef   :  { %2292 = vmatprep.subr.mxu1 %v2506_v0 }
0x12f0   :  { %2293 = vmatpush3.msra.mxu1 %v2817_v36 }
0x12f1   :  { %2308 = vmatprep.subr.mxu1 %v2506_v0 }
0x13a1   :  { %v953_v42 = vpop.f32.mrf.mxu1 }
0x13a2   :  { %v957_v43 = vadd.f32 %v953_v42, %v180_v40  ;;  %v2896_v40 = vpop.f32.mrf.mxu0 }
0x13a3   :  { %v2254_v44 = vpop.f32.mrf.mxu1 }
0x13a4   :  { %v2017_v1 = vmul.f32 -1.442695, %v957_v43  ;;  %v2898_v41 = vpop.f32.mrf.mxu0  ;;  %v1079_v44 = vadd.f32 %v2853_v46, %v1078_v39 }
0x13a9   :  { %v1173_v48 = vpop.f32.mrf.mxu1 }
0x13aa   :  { %v1177_v49 = vadd.f32 %v1173_v48, %v1069_v47 }
0x13ab   :  { %v2285_v50 = vpop.f32.mrf.mxu1 }
0x13ac   :  { %2434 = vtanh.f32 %v1177_v49  ;;  %v2027_v10 = vmul.f32 -1.442695, %v1177_v49 }
0x13ae   :  { %2436 = vpow2.f32 %v2027_v10 }
0x13b9   :  { %v2435_v51 = vpop.eup %2434 }
0x13ba   :  { %1187 = vrot.lane.b32.xlu0 %v2435_v51, %s2508_s25 }
0x13bb   :  { %v2437_v58 = vpop.eup %2436 }
0x13bc   :  { %v1181_v52 = vadd.f32 1.0, %v2437_v58 }
0x13be   :  { %2438 = vrcp.f32 %v1181_v52 }
0x13cb   :  { %v2439_v54 = vpop.eup %2438 }
0x13cc   :  { %v1185_v60 = vmul.f32 0.0, %v2439_v54 }
0x142c   :  { %v1188_v55 = vpop.permute.xlu0 %1187 }
0x142d   :  { %v1190_v57 = vmul.f32 %v2439_v54, %v1188_v55 }
0x142f   :  { %1192 = vrot.lane.b32.xlu1 %v1190_v57, %s2509_s3 }
0x14a1   :  { %v1193_v2 = vpop.permute.xlu1 %1192 }
0x14a2   :  { %v1195_v61 = vadd.f32 %v1193_v2, %v1185_v60 }
0x14a4   :  { %2440 = vtanh.f32 %v1195_v61 }
0x14a5   :  { %2442 = vtanh.f32 %v957_v43 }
0x14a6   :  { %2444 = vpow2.f32 %v2017_v1  ;;  %v1084_v1 = vadd.f32 %v2268_v38, %v2853_v46 }
0x14b1   :  { %v2441_v62 = vpop.eup %2440 }
0x14b2   :  { %1198 = vrot.lane.b32.xlu0 %v2441_v62, %s2508_s25  ;;  %v2443_v63 = vpop.eup %2442 }
0x14b3   :  { %v2445_v4 = vpop.eup %2444 }
0x14b4   :  { %v961_v3 = vadd.f32 1.0, %v2445_v4 }
0x14b6   :  { %967 = vrot.lane.b32.xlu0 %v2443_v63, %s2508_s25  ;;  %2446 = vrcp.f32 %v961_v3 }
0x14c3   :  { %v2447_v6 = vpop.eup %2446 }
0x14c4   :  { %v965_v56 = vmul.f32 %v2447_v6, %v2790_v59 }
0x1524   :  { %v1199_v7 = vpop.permute.xlu0 %1198 }
0x1525   :  { %v1201_v5 = vmul.f32 %v2439_v54, %v1199_v7 }
0x1527   :  { %1203 = vrot.lane.b32.xlu1 %v1201_v5, %s2509_s3 }
0x1528   :  { %v968_v8 = vpop.permute.xlu0 %967 }
0x1529   :  { %v970_v9 = vmul.f32 %v2447_v6, %v968_v8 }
0x152b   :  { %972 = vrot.lane.b32.xlu0 %v970_v9, %s2509_s3 }
0x1599   :  { %v1204_v11 = vpop.permute.xlu1 %1203 }
0x159a   :  { %2295 = vmatmul.mubr.msk.f32.vlgmr.msra.gmra.mxu1 %vm183_vm2, %v1204_v11 }
0x159b   :  { %2309 = vmatpush3.msra.mxu1 %v2797_v33  ;;  %2316 = vmatprep.mubr.msk.f32.mxu1 %vm2507_vm0, %v2506_v0 }
0x159c   :  { %2310 = vmatprep.subr.mxu1 %v2506_v0 }
0x159d   :  { %v973_v12 = vpop.permute.xlu0 %972  ;;  %2311 = vmatpush3.msra.mxu1 %v2803_v34 }
0x159e   :  { %v975_v13 = vadd.f32 %v973_v12, %v965_v56  ;;  %2312 = vmatprep.subr.mxu1 %v2506_v0 }
0x159f   :  { %2313 = vmatpush3.msra.mxu1 %v2810_v35 }
0x15a0   :  { %2448 = vtanh.f32 %v975_v13  ;;  %2314 = vmatprep.subr.mxu1 %v2506_v0 }
0x15a1   :  { %2315 = vmatpush3.msra.mxu1 %v2817_v36 }
0x15a2   :  { %2330 = vmatprep.subr.mxu1 %v2506_v0 }
0x15ad   :  { %v2449_v14 = vpop.eup %2448 }
0x15ae   :  { %978 = vrot.lane.b32.xlu0 %v2449_v14, %s2508_s25 }
0x1620   :  { %v979_v15 = vpop.permute.xlu0 %978 }
0x1621   :  { %v981_v16 = vmul.f32 %v2447_v6, %v979_v15 }
0x1623   :  { %998 = vrot.lane.b32.xlu0 %v981_v16, %s2509_s3 }
0x165a   :  { %v1273_v18 = vpop.f32.mrf.mxu1 }
0x165b   :  { %v1277_v20 = vadd.f32 %v1273_v18, %v1074_v17 }
0x165c   :  { %v2296_v29 = vpop.f32.mrf.mxu1 }
0x165d   :  { %2450 = vtanh.f32 %v1277_v20  ;;  %v2029_v23 = vmul.f32 -1.442695, %v1277_v20  ;;  %v1089_v29 = vadd.f32 %v2853_v46, %v2898_v41  ;;  %v1094_v41 = vadd.f32 %v2896_v40, %v2853_v46 }
0x165f   :  { %2452 = vpow2.f32 %v2029_v23 }
0x166a   :  { %v2451_v21 = vpop.eup %2450 }
0x166b   :  { %1287 = vrot.lane.b32.xlu1 %v2451_v21, %s2508_s25 }
0x166c   :  { %v2453_v53 = vpop.eup %2452 }
0x166d   :  { %v1281_v24 = vadd.f32 1.0, %v2453_v53 }
0x166f   :  { %2454 = vrcp.f32 %v1281_v24 }
0x167c   :  { %v2455_v19 = vpop.eup %2454 }
0x167d   :  { %v1285_v27 = vmul.f32 %v2455_v19, %v1195_v61 }
0x1695   :  { %v999_v22 = vpop.permute.xlu0 %998 }
0x1696   :  { %2273 = vmatmul.mubr.msk.f32.gmra.mxu0 %vm183_vm2, %v999_v22 }
0x1697   :  { %2305 = vmatprep.mubr.msk.f32.mxu0 %vm2507_vm0, %v2506_v0 }
0x16dd   :  { %v1288_v25 = vpop.permute.xlu1 %1287 }
0x16de   :  { %v1290_v26 = vmul.f32 %v2455_v19, %v1288_v25 }
0x16e0   :  { %1292 = vrot.lane.b32.xlu1 %v1290_v26, %s2509_s3 }
0x1752   :  { %v1293_v28 = vpop.permute.xlu1 %1292 }
0x1753   :  { %v1295_v30 = vadd.f32 %v1293_v28, %v1285_v27 }
0x1755   :  { %2456 = vtanh.f32 %v1295_v30 }
0x1756   :  { %v2900_v42 = vpop.f32.mrf.mxu0 }
0x1758   :  { %v2902_v43 = vpop.f32.mrf.mxu0 }
0x1762   :  { %v2457_v31 = vpop.eup %2456 }
0x1763   :  { %1298 = vrot.lane.b32.xlu1 %v2457_v31, %s2508_s25 }
0x17d5   :  { %v1299_v59 = vpop.permute.xlu1 %1298 }
0x17d6   :  { %v1301_v32 = vmul.f32 %v2455_v19, %v1299_v59 }
0x17d8   :  { %1303 = vrot.lane.b32.xlu1 %v1301_v32, %s2509_s3 }
0x184a   :  { %v1304_v37 = vpop.permute.xlu1 %1303 }
0x184b   :  { %2306 = vmatmul.mubr.msk.f32.vlgmr.msra.gmra.mxu0 %vm183_vm2, %v1304_v37 }
0x184c   :  { %2320 = vmatpush3.msra.mxu0 %v2797_v33  ;;  %2327 = vmatprep.mubr.msk.f32.mxu0 %vm2507_vm0, %v2506_v0 }
0x184d   :  { %2321 = vmatprep.subr.mxu0 %v2506_v0 }
0x184e   :  { %2322 = vmatpush3.msra.mxu0 %v2803_v34 }
0x184f   :  { %2323 = vmatprep.subr.mxu0 %v2506_v0 }
0x1850   :  { %2324 = vmatpush3.msra.mxu0 %v2810_v35 }
0x1851   :  { %2325 = vmatprep.subr.mxu0 %v2506_v0 }
0x1852   :  { %2326 = vmatpush3.msra.mxu0 %v2817_v36 }
0x1853   :  { %2341 = vmatprep.subr.mxu0 %v2506_v0 }
0x190b   :  { %v1373_v45 = vpop.f32.mrf.mxu0 }
0x190c   :  { %v1377_v47 = vadd.f32 %v1373_v45, %v1079_v44 }
0x190d   :  { %v2307_v48 = vpop.f32.mrf.mxu0 }
0x190e   :  { %2458 = vtanh.f32 %v1377_v47  ;;  %v2031_v50 = vmul.f32 -1.442695, %v1377_v47 }
0x1910   :  { %2460 = vpow2.f32 %v2031_v50 }
0x191b   :  { %v2459_v49 = vpop.eup %2458 }
0x191c   :  { %1387 = vrot.lane.b32.xlu0 %v2459_v49, %s2508_s25 }
0x191d   :  { %v2461_v51 = vpop.eup %2460 }
0x191e   :  { %v1381_v10 = vadd.f32 1.0, %v2461_v51 }
0x1920   :  { %2462 = vrcp.f32 %v1381_v10 }
0x192d   :  { %v2463_v58 = vpop.eup %2462 }
0x192e   :  { %v1385_v55 = vmul.f32 %v2463_v58, %v1295_v30 }
0x198e   :  { %v1388_v52 = vpop.permute.xlu0 %1387 }
0x198f   :  { %v1390_v54 = vmul.f32 %v2463_v58, %v1388_v52 }
0x1991   :  { %1392 = vrot.lane.b32.xlu1 %v1390_v54, %s2509_s3 }
0x1a03   :  { %v1393_v57 = vpop.permute.xlu1 %1392 }
0x1a04   :  { %v1395_v60 = vadd.f32 %v1393_v57, %v1385_v55  ;;  %v1099_v57 = vadd.f32 %v2853_v46, %v2902_v43 }
0x1a06   :  { %2464 = vtanh.f32 %v1395_v60 }
0x1a13   :  { %v2465_v2 = vpop.eup %2464 }
0x1a14   :  { %1398 = vrot.lane.b32.xlu0 %v2465_v2, %s2508_s25 }
0x1a86   :  { %v1399_v61 = vpop.permute.xlu0 %1398 }
0x1a87   :  { %v1401_v62 = vmul.f32 %v2463_v58, %v1399_v61 }
0x1a89   :  { %1403 = vrot.lane.b32.xlu1 %v1401_v62, %s2509_s3 }
0x1afb   :  { %v1404_v63 = vpop.permute.xlu1 %1403 }
0x1afc   :  { %2317 = vmatmul.mubr.msk.f32.vlgmr.msra.gmra.mxu1 %vm183_vm2, %v1404_v63 }
0x1afd   :  { %2331 = vmatpush3.msra.mxu1 %v2797_v33  ;;  %2338 = vmatprep.mubr.msk.f32.mxu1 %vm2507_vm0, %v2506_v0 }
0x1afe   :  { %2332 = vmatprep.subr.mxu1 %v2506_v0 }
0x1aff   :  { %2333 = vmatpush3.msra.mxu1 %v2803_v34 }
0x1b00   :  { %2334 = vmatprep.subr.mxu1 %v2506_v0 }
0x1b01   :  { %2335 = vmatpush3.msra.mxu1 %v2810_v35 }
0x1b02   :  { %2336 = vmatprep.subr.mxu1 %v2506_v0 }
0x1b03   :  { %2337 = vmatpush3.msra.mxu1 %v2817_v36 }
0x1b04   :  { %2352 = vmatprep.subr.mxu1 %v2506_v0 }
0x1bbc   :  { %v1473_v4 = vpop.f32.mrf.mxu1 }
0x1bbd   :  { %v1477_v3 = vadd.f32 %v1473_v4, %v1084_v1 }
0x1bbe   :  { %v2318_v7 = vpop.f32.mrf.mxu1 }
0x1bbf   :  { %2466 = vtanh.f32 %v1477_v3  ;;  %v2033_v6 = vmul.f32 -1.442695, %v1477_v3 }
0x1bc1   :  { %2468 = vpow2.f32 %v2033_v6 }
0x1bcc   :  { %v2467_v5 = vpop.eup %2466 }
0x1bcd   :  { %1487 = vrot.lane.b32.xlu0 %v2467_v5, %s2508_s25 }
0x1bce   :  { %v2469_v8 = vpop.eup %2468 }
0x1bcf   :  { %v1481_v9 = vadd.f32 1.0, %v2469_v8 }
0x1bd1   :  { %2470 = vrcp.f32 %v1481_v9 }
0x1bde   :  { %v2471_v11 = vpop.eup %2470 }
0x1bdf   :  { %v1485_v13 = vmul.f32 %v2471_v11, %v1395_v60 }
0x1c3f   :  { %v1488_v56 = vpop.permute.xlu0 %1487 }
0x1c40   :  { %v1490_v12 = vmul.f32 %v2471_v11, %v1488_v56 }
0x1c42   :  { %1492 = vrot.lane.b32.xlu1 %v1490_v12, %s2509_s3 }
0x1cb4   :  { %v1493_v14 = vpop.permute.xlu1 %1492 }
0x1cb5   :  { %v1495_v15 = vadd.f32 %v1493_v14, %v1485_v13  ;;  %v1104_v13 = vadd.f32 %v2900_v42, %v2853_v46  ;;  %v1905_v42 = vld [vmem:[%s3003_s7 + $0x18] sm:$0xff] }
0x1cb7   :  { %2472 = vtanh.f32 %v1495_v15 }
0x1cc4   :  { %v2473_v16 = vpop.eup %2472 }
0x1cc5   :  { %1498 = vrot.lane.b32.xlu0 %v2473_v16, %s2508_s25 }
0x1d37   :  { %v1499_v17 = vpop.permute.xlu0 %1498 }
0x1d38   :  { %v1501_v18 = vmul.f32 %v2471_v11, %v1499_v17 }
0x1d3a   :  { %1503 = vrot.lane.b32.xlu1 %v1501_v18, %s2509_s3 }
0x1dac   :  { %v1504_v20 = vpop.permute.xlu1 %1503 }
0x1dad   :  { %2328 = vmatmul.mubr.msk.f32.vlgmr.msra.gmra.mxu0 %vm183_vm2, %v1504_v20 }
0x1dae   :  { %2342 = vmatpush3.msra.mxu0 %v2797_v33  ;;  %2349 = vmatprep.mubr.msk.f32.mxu0 %vm2507_vm0, %v2506_v0 }
0x1daf   :  { %2343 = vmatprep.subr.mxu0 %v2506_v0 }
0x1db0   :  { %2344 = vmatpush3.msra.mxu0 %v2803_v34 }
0x1db1   :  { %2345 = vmatprep.subr.mxu0 %v2506_v0 }
0x1db2   :  { %2346 = vmatpush3.msra.mxu0 %v2810_v35 }
0x1db3   :  { %2347 = vmatprep.subr.mxu0 %v2506_v0 }
0x1db4   :  { %2348 = vmatpush3.msra.mxu0 %v2817_v36 }
0x1db5   :  { %2363 = vmatprep.subr.mxu0 %v2506_v0 }
0x1e6d   :  { %v1573_v21 = vpop.f32.mrf.mxu0 }
0x1e6e   :  { %v1577_v22 = vadd.f32 %v1573_v21, %v1089_v29 }
0x1e6f   :  { %v2329_v23 = vpop.f32.mrf.mxu0 }
0x1e70   :  { %2474 = vtanh.f32 %v1577_v22  ;;  %v2035_v24 = vmul.f32 -1.442695, %v1577_v22 }
0x1e72   :  { %2476 = vpow2.f32 %v2035_v24 }
0x1e7d   :  { %v2475_v53 = vpop.eup %2474 }
0x1e7e   :  { %1587 = vrot.lane.b32.xlu0 %v2475_v53, %s2508_s25 }
0x1e7f   :  { %v2477_v19 = vpop.eup %2476 }
0x1e80   :  { %v1581_v25 = vadd.f32 1.0, %v2477_v19  ;;  %v1904_v19 = vld [vmem:[%s3003_s7 + $0x10] sm:$0xff] }
0x1e82   :  { %2478 = vrcp.f32 %v1581_v25  ;;  %v1903_v25 = vld [vmem:[%s3003_s7 + $0x8] sm:$0xff] }
0x1e8f   :  { %v2479_v26 = vpop.eup %2478 }
0x1e90   :  { %v1585_v30 = vmul.f32 %v2479_v26, %v1495_v15 }
0x1ef0   :  { %v1588_v27 = vpop.permute.xlu0 %1587 }
0x1ef1   :  { %v1590_v28 = vmul.f32 %v2479_v26, %v1588_v27 }
0x1ef3   :  { %1592 = vrot.lane.b32.xlu1 %v1590_v28, %s2509_s3 }
0x1f65   :  { %v1593_v31 = vpop.permute.xlu1 %1592 }
0x1f66   :  { %v1595_v59 = vadd.f32 %v1593_v31, %v1585_v30 }
0x1f68   :  { %2480 = vtanh.f32 %v1595_v59 }
0x1f75   :  { %v2481_v32 = vpop.eup %2480 }
0x1f76   :  { %1598 = vrot.lane.b32.xlu0 %v2481_v32, %s2508_s25 }
0x1fe8   :  { %v1599_v37 = vpop.permute.xlu0 %1598 }
0x1fe9   :  { %v1601_v38 = vmul.f32 %v2479_v26, %v1599_v37  ;;  %v1902_v26 = vld [vmem:[%s3003_s7] sm:$0xff] }
0x1feb   :  { %1603 = vrot.lane.b32.xlu1 %v1601_v38, %s2509_s3 }
0x205d   :  { %v1604_v39 = vpop.permute.xlu1 %1603 }
0x205e   :  { %2339 = vmatmul.mubr.msk.f32.vlgmr.msra.gmra.mxu1 %vm183_vm2, %v1604_v39 }
0x205f   :  { %2353 = vmatpush3.msra.mxu1 %v2797_v33  ;;  %2360 = vmatprep.mubr.msk.f32.mxu1 %vm2507_vm0, %v2506_v0 }
0x2060   :  { %2354 = vmatprep.subr.mxu1 %v2506_v0 }
0x2061   :  { %2355 = vmatpush3.msra.mxu1 %v2803_v34 }
0x2062   :  { %2356 = vmatprep.subr.mxu1 %v2506_v0 }
0x2063   :  { %2357 = vmatpush3.msra.mxu1 %v2810_v35 }
0x2064   :  { %2358 = vmatprep.subr.mxu1 %v2506_v0 }
0x2065   :  { %2359 = vmatpush3.msra.mxu1 %v2817_v36 }
0x211e   :  { %v1673_v44 = vpop.f32.mrf.mxu1 }
0x211f   :  { %v1677_v33 = vadd.f32 %v1673_v44, %v1094_v41 }
0x2120   :  { %v2340_v45 = vpop.f32.mrf.mxu1 }
0x2121   :  { %2482 = vtanh.f32 %v1677_v33  ;;  %v2037_v48 = vmul.f32 -1.442695, %v1677_v33 }
0x2123   :  { %2484 = vpow2.f32 %v2037_v48 }
0x212e   :  { %v2483_v47 = vpop.eup %2482 }
0x212f   :  { %1687 = vrot.lane.b32.xlu0 %v2483_v47, %s2508_s25 }
0x2130   :  { %v2485_v34 = vpop.eup %2484 }
0x2131   :  { %v1681_v49 = vadd.f32 1.0, %v2485_v34 }
0x2133   :  { %2486 = vrcp.f32 %v1681_v49 }
0x2140   :  { %v2487_v35 = vpop.eup %2486 }
0x2141   :  { %v1685_v36 = vmul.f32 %v2487_v35, %v1595_v59  ;;  %v2042_v59 = vld [vmem:[%s3004_s8] ss:$0 sm:$0xff] }
0x21a1   :  { %v1688_v50 = vpop.permute.xlu0 %1687 }
0x21a2   :  { %v1690_v51 = vmul.f32 %v2487_v35, %v1688_v50 }
0x21a4   :  { %1692 = vrot.lane.b32.xlu1 %v1690_v51, %s2509_s3 }
0x2216   :  { %v1693_v10 = vpop.permute.xlu1 %1692 }
0x2217   :  { %v1695_v40 = vadd.f32 %v1693_v10, %v1685_v36 }
0x2219   :  { %2488 = vtanh.f32 %v1695_v40 }
0x2226   :  { %v2489_v58 = vpop.eup %2488 }
0x2227   :  { %1698 = vrot.lane.b32.xlu0 %v2489_v58, %s2508_s25 }
0x2299   :  { %v1699_v52 = vpop.permute.xlu0 %1698 }
0x229a   :  { %v1701_v54 = vmul.f32 %v2487_v35, %v1699_v52 }
0x229c   :  { %1703 = vrot.lane.b32.xlu1 %v1701_v54, %s2509_s3 }
0x230e   :  { %v1704_v55 = vpop.permute.xlu1 %1703 }
0x230f   :  { %2350 = vmatmul.mubr.msk.f32.vlgmr.msra.gmra.mxu0 %vm183_vm2, %v1704_v55 }
0x2310   :  { %2371 = vmatprep.mubr.msk.f32.mxu0 %vm2507_vm0, %v2506_v0  ;;  %2364 = vmatpush3.msra.mxu0 %v1905_v42 }
0x2311   :  { %2365 = vmatprep.subr.mxu0 %v2506_v0 }
0x2312   :  { %2366 = vmatpush3.msra.mxu0 %v1904_v19 }
0x2313   :  { %2367 = vmatprep.subr.mxu0 %v2506_v0 }
0x2314   :  { %2368 = vmatpush3.msra.mxu0 %v1903_v25 }
0x2315   :  { %2369 = vmatprep.subr.mxu0 %v2506_v0 }
0x2316   :  { %2370 = vmatpush3.msra.mxu0 %v1902_v26 }
0x23cf   :  { %v1773_v60 = vpop.f32.mrf.mxu0 }
0x23d0   :  { %v1777_v2 = vadd.f32 %v1773_v60, %v1099_v57 }
0x23d1   :  { %v2351_v61 = vpop.f32.mrf.mxu0 }
0x23d2   :  { %2490 = vtanh.f32 %v1777_v2  ;;  %v2039_v63 = vmul.f32 -1.442695, %v1777_v2 }
0x23d4   :  { %2492 = vpow2.f32 %v2039_v63 }
0x23df   :  { %v2491_v62 = vpop.eup %2490 }
0x23e0   :  { %1787 = vrot.lane.b32.xlu0 %v2491_v62, %s2508_s25 }
0x23e1   :  { %v2493_v1 = vpop.eup %2492 }
0x23e2   :  { %v1781_v4 = vadd.f32 1.0, %v2493_v1 }
0x23e4   :  { %2494 = vrcp.f32 %v1781_v4 }
0x23f1   :  { %v2495_v3 = vpop.eup %2494 }
0x23f2   :  { %v1785_v6 = vmul.f32 %v2495_v3, %v1695_v40 }
0x2452   :  { %v1788_v7 = vpop.permute.xlu0 %1787 }
0x2453   :  { %v1790_v5 = vmul.f32 %v2495_v3, %v1788_v7 }
0x2455   :  { %1792 = vrot.lane.b32.xlu1 %v1790_v5, %s2509_s3 }
0x24c7   :  { %v1793_v8 = vpop.permute.xlu1 %1792 }
0x24c8   :  { %v1795_v43 = vadd.f32 %v1793_v8, %v1785_v6 }
0x24ca   :  { %2496 = vtanh.f32 %v1795_v43 }
0x24d7   :  { %v2497_v9 = vpop.eup %2496 }
0x24d8   :  { %1798 = vrot.lane.b32.xlu0 %v2497_v9, %s2508_s25 }
0x254a   :  { %v1799_v11 = vpop.permute.xlu0 %1798 }
0x254b   :  { %v1801_v56 = vmul.f32 %v2495_v3, %v1799_v11 }
0x254d   :  { %1803 = vrot.lane.b32.xlu1 %v1801_v56, %s2509_s3 }
0x25bf   :  { %v1804_v12 = vpop.permute.xlu1 %1803 }
0x25c0   :  { %2361 = vmatmul.mubr.msk.f32.vlgmr.msra.gmra.mxu1 %vm183_vm2, %v1804_v12 }
0x2680   :  { %v1873_v14 = vpop.f32.mrf.mxu1 }
0x2681   :  { %v1877_v15 = vadd.f32 %v1873_v14, %v1104_v13 }
0x2682   :  { %v2362_v16 = vpop.f32.mrf.mxu1 }
0x2683   :  { %2498 = vtanh.f32 %v1877_v15  ;;  %v2041_v18 = vmul.f32 -1.442695, %v1877_v15 }
0x2685   :  { %2500 = vpow2.f32 %v2041_v18 }
0x2690   :  { %v2499_v17 = vpop.eup %2498 }
0x2691   :  { %1887 = vrot.lane.b32.xlu0 %v2499_v17, %s2508_s25 }
0x2692   :  { %v2501_v20 = vpop.eup %2500 }
0x2693   :  { %v1881_v29 = vadd.f32 1.0, %v2501_v20 }
0x2695   :  { %2502 = vrcp.f32 %v1881_v29 }
0x26a2   :  { %v2503_v21 = vpop.eup %2502 }
0x26a3   :  { %v1885_v53 = vmul.f32 %v2503_v21, %v1795_v43 }
0x2703   :  { %v1888_v22 = vpop.permute.xlu0 %1887 }
0x2704   :  { %v1890_v23 = vmul.f32 %v2503_v21, %v1888_v22 }
0x2706   :  { %1892 = vrot.lane.b32.xlu1 %v1890_v23, %s2509_s3 }
0x2778   :  { %v1893_v24 = vpop.permute.xlu1 %1892 }
0x2779   :  { %v1895_v46 = vadd.f32 %v1893_v24, %v1885_v53 }
0x277b   :  { %2504 = vtanh.f32 %v1895_v46 }
0x2788   :  { %v2505_v27 = vpop.eup %2504 }
0x2789   :  { %1898 = vrot.lane.b32.xlu0 %v2505_v27, %s2508_s25 }
0x27fb   :  { %v1899_v28 = vpop.permute.xlu0 %1898 }
0x27fc   :  { %v1901_v30 = vmul.f32 %v2503_v21, %v1899_v28 }
0x27fe   :  { %1914 = vrot.lane.b32.xlu1 %v1901_v30, %s2509_s3 }
0x2870   :  { %v1915_v31 = vpop.permute.xlu1 %1914 }
0x2871   :  { %2372 = vmatmul.mubr.msk.f32.vlgmr.msra.gmra.mxu0 %vm183_vm2, %v1915_v31 }
0x2931   :  { %v1984_v32 = vpop.f32.mrf.mxu0 }
0x2932   :  { %v1985_v37 = vadd.f32 %v2042_v59, %v1984_v32 }
0x2933   :  { %v2373_v38 = vpop.f32.mrf.mxu0 }
0x2934   :  { %1989 = vst.msk [vmem:[%s3005_s9] sm:$0xff] %vm1988_vm3, %v1985_v37 }

</bundles_post_ra>
